<compile_context>
chip_gen: v5e
topology: v5e:2x2
jax: 0.10.0
libtpu: 0.0.40
codegen_flags: <defaults>
</compile_context>

<pallas_src>
import functools
import math

import jax
import jax.numpy as jnp
import numpy as np
from jax.experimental import pallas as pl
from jax.experimental.pallas import tpu as pltpu

NEG_INF = -1e18


def _round_up(x, m):
    return ((x + m - 1) // m) * m


def _attention_core(q2, Q, K, V, mask, w_oc, b_oc, gamma, beta, slab_ref, *,
                    num_heads, d_k, d_v, ln_eps, bc, sq, sk, cdt):
    """Batched attention body.

    q2:   [bc*sq, Dm]    f32 residual rows.
    Q:    [bc*sq, H*d_k] f32 projections (1/sqrt(d_k) already folded into wq).
    K:    [bc*sk, H*d_k] f32.   V: [bc*sk, H*d_v] f32.
    mask: [bc, sq, sk]   (0 => masked).
    Writes one lane-dense slab [bc, sq, P_pad]:
        [..., :Dm]           LayerNorm(residual + linear_o(ctx))
        [..., Dm:2*Dm]       linear_context(ctx)
        [..., 2*Dm:2*Dm+sk]  mean-over-heads attention
    """
    f32 = jnp.float32
    H = num_heads
    d_model = gamma.shape[-1]
    rq = bc * sq
    rk = bc * sk
    G = H * bc                                    # fused (head, batch) axis

    # Head-major gather: ONE minor reshape + ONE transpose per tensor (no
    # per-head slice/stack/concat loops).  Group index g = h*bc + b.
    def to_heads(X, rows, s, d):
        Xh = X.astype(cdt).reshape(rows, H, d)            # split lane dim
        Xh = jnp.transpose(Xh, (1, 0, 2))                 # [H, rows, d]
        return Xh.reshape(H, bc, s, d).reshape(G, s, d)   # leading-only splits

    Qh = to_heads(Q, rq, sq, d_k)
    Kh = to_heads(K, rk, sk, d_k)
    Vh = to_heads(V, rk, sk, d_v)

    # Additive mask bias: one vectorized where, broadcast over heads.  Batch is
    # a real batch dim -> no cross-batch score FLOPs / VMEM and no bias concat.
    bias = jnp.where(mask == 0.0, NEG_INF, 0.0).astype(f32)       # [bc,sq,sk]
    bias_g = jnp.broadcast_to(bias[None], (H, bc, sq, sk)).reshape(G, sq, sk)

    # Scores: single batched rank-3 einsum (scale folded into wq on the host).
    scores = jnp.einsum('gqd,gkd->gqk', Qh, Kh,
                        preferred_element_type=f32) + bias_g

    m = jnp.max(scores, axis=-1, keepdims=True)
    e = jnp.exp(scores - m)
    denom = jnp.sum(e, axis=-1, keepdims=True)
    attn = e / denom            # exact divide: rows sum to 1 (parity w/ torch)

    ctx_h = jnp.einsum('gqk,gkd->gqd', attn.astype(cdt), Vh,
                       preferred_element_type=f32)                 # [G,sq,dv]

    # Back to row-major [bc*sq, H*d_v] (lane order h-major, matches permute+view).
    ctx = ctx_h.reshape(H, rq, d_v)
    ctx = jnp.transpose(ctx, (1, 0, 2)).reshape(rq, H * d_v)

    # Mean attention over heads: reduce the leading head axis.
    attn_mean = jnp.mean(attn.reshape(H, bc, sq, sk), axis=0)      # [bc,sq,sk]

    # Fused output projection: one [bc*sq, H*d_v] @ [H*d_v, 2*Dm] matmul.
    oc = jnp.dot(ctx.astype(cdt), w_oc, preferred_element_type=f32) + b_oc
    indices = oc[:, :d_model]
    context = oc[:, d_model:2 * d_model]

    # TODO(synk): dropout is identity here (inference-mode forward pass).
    indices = indices + q2                                         # residual
    mu = jnp.mean(indices, axis=-1, keepdims=True)
    var = jnp.mean(jnp.square(indices - mu), axis=-1, keepdims=True)
    out = (indices - mu) * jax.lax.rsqrt(var + ln_eps) * gamma + beta

    # One lane-dense packed output slab (out | context | attn | zero pad),
    # written with a single dense store; split in the JAX wrapper.
    p_pad = slab_ref.shape[-1]
    used = 2 * d_model + sk
    pieces = [out, context, attn_mean.reshape(rq, sk)]
    if p_pad > used:
        pieces.append(jnp.zeros((rq, p_pad - used), f32))
    slab = jnp.concatenate(pieces, axis=-1)
    slab_ref[...] = slab.reshape(bc, sq, p_pad)


def mha_kernel_fused(q_ref, mask_ref, w_qkv_ref, b_qkv_ref, w_oc_ref, b_oc_ref,
                     gamma_ref, beta_ref, slab_ref, *, num_heads, d_k, d_v,
                     ln_eps, bc, sq, sk, cdt):
    """Self-attention path (query == key == value): one fused QKV matmul."""
    f32 = jnp.float32
    d_model = gamma_ref.shape[-1]
    q2 = q_ref[...].reshape(bc * sq, d_model)
    X = jnp.dot(q2.astype(cdt), w_qkv_ref[...],
                preferred_element_type=f32) + b_qkv_ref[...]
    hk = num_heads * d_k
    hv = num_heads * d_v
    Q = X[:, :hk]
    K = X[:, hk:2 * hk]
    V = X[:, 2 * hk:2 * hk + hv]
    _attention_core(q2, Q, K, V, mask_ref[...], w_oc_ref[...], b_oc_ref[...],
                    gamma_ref[...], beta_ref[...], slab_ref,
                    num_heads=num_heads, d_k=d_k, d_v=d_v, ln_eps=ln_eps,
                    bc=bc, sq=sq, sk=sk, cdt=cdt)


def mha_kernel_general(q_ref, k_ref, v_ref, mask_ref, wq_ref, bq_ref, wk_ref,
                       bk_ref, wv_ref, bv_ref, w_oc_ref, b_oc_ref,
                       gamma_ref, beta_ref, slab_ref, *, num_heads, d_k, d_v,
                       ln_eps, bc, sq, sk, cdt):
    """General path (distinct query / key / value tensors)."""
    f32 = jnp.float32
    d_model = gamma_ref.shape[-1]
    q2 = q_ref[...].reshape(bc * sq, d_model)
    k2 = k_ref[...].reshape(bc * sk, d_model)
    v2 = v_ref[...].reshape(bc * sk, d_model)
    Q = jnp.dot(q2.astype(cdt), wq_ref[...], preferred_element_type=f32) + bq_ref[...]
    K = jnp.dot(k2.astype(cdt), wk_ref[...], preferred_element_type=f32) + bk_ref[...]
    V = jnp.dot(v2.astype(cdt), wv_ref[...], preferred_element_type=f32) + bv_ref[...]
    _attention_core(q2, Q, K, V, mask_ref[...], w_oc_ref[...], b_oc_ref[...],
                    gamma_ref[...], beta_ref[...], slab_ref,
                    num_heads=num_heads, d_k=d_k, d_v=d_v, ln_eps=ln_eps,
                    bc=bc, sq=sq, sk=sk, cdt=cdt)


def pack_params(p, *, d_k, dtype=jnp.bfloat16):
    """Host-side packing: fold 1/sqrt(d_k) into wq/bq, fuse QKV and wo|wc.

    Weights are emitted in `dtype` (default bf16 for the MXU); biases and
    LayerNorm params stay f32 (they are added after f32 accumulation).
    """
    f32 = jnp.float32
    scale = 1.0 / math.sqrt(d_k)
    wq_s = (p["wq"] * scale).astype(dtype)
    bq_s = (p["bq"] * scale).astype(f32)
    wk, bk = p["wk"].astype(dtype), p["bk"].astype(f32)
    wv, bv = p["wv"].astype(dtype), p["bv"].astype(f32)
    return {
        "dtype": dtype,
        "wq": wq_s, "bq": bq_s, "wk": wk, "bk": bk, "wv": wv, "bv": bv,
        "w_qkv": jnp.concatenate([wq_s, wk, wv], axis=1),
        "b_qkv": jnp.concatenate([bq_s, bk, bv], axis=1),
        "w_oc": jnp.concatenate([p["wo"], p["wc"]], axis=1).astype(dtype),
        "b_oc": jnp.concatenate([p["bo"], p["bc"]], axis=1).astype(f32),
        "gamma": p["gamma"].astype(f32), "beta": p["beta"].astype(f32),
    }


def _default_batch_chunk(B):
    """Per-generation default: split across v7x's 2 TensorCores, single fat
    grid step on single-TC v5e/v6e (each extra step costs ~0.35us overhead)."""
    try:
        kind = jax.devices()[0].device_kind.lower()
        if "v7" in kind and B % 2 == 0:
            return B // 2
    except Exception:
        pass
    return B


def multihead_attention(query, key, value, mask, packed, *, num_heads, d_k,
                        d_v, ln_eps=1e-5, fuse_qkv=False, batch_chunk=None):
    B, Sq, Dm = query.shape
    _, Sk, _ = key.shape
    if fuse_qkv:
        assert (query is key) and (query is value) and Sq == Sk, \
            "fuse_qkv=True requires self-attention (query is key is value)"
    bc = _default_batch_chunk(B) if batch_chunk is None else batch_chunk
    assert B % bc == 0

    cdt = packed["dtype"]
    p_used = 2 * Dm + Sk
    p_pad = _round_up(p_used, 128)        # lane-dense packed output slab

    def act(seq, lane):
        return pl.BlockSpec((bc, seq, lane), lambda g: (g, 0, 0))

    def full(arr):
        return pl.BlockSpec(arr.shape, lambda g: (0,) * arr.ndim)

    common = dict(num_heads=num_heads, d_k=d_k, d_v=d_v, ln_eps=ln_eps,
                  bc=bc, sq=Sq, sk=Sk, cdt=cdt)

    if fuse_qkv:
        kernel = functools.partial(mha_kernel_fused, **common)
        in_specs = [act(Sq, Dm), act(Sq, Sk),
                    full(packed["w_qkv"]), full(packed["b_qkv"]),
                    full(packed["w_oc"]), full(packed["b_oc"]),
                    full(packed["gamma"]), full(packed["beta"])]
        args = (query, mask, packed["w_qkv"], packed["b_qkv"],
                packed["w_oc"], packed["b_oc"], packed["gamma"], packed["beta"])
    else:
        kernel = functools.partial(mha_kernel_general, **common)
        in_specs = [act(Sq, Dm), act(Sk, Dm), act(Sk, Dm), act(Sq, Sk),
                    full(packed["wq"]), full(packed["bq"]),
                    full(packed["wk"]), full(packed["bk"]),
                    full(packed["wv"]), full(packed["bv"]),
                    full(packed["w_oc"]), full(packed["b_oc"]),
                    full(packed["gamma"]), full(packed["beta"])]
        args = (query, key, value, mask,
                packed["wq"], packed["bq"], packed["wk"], packed["bk"],
                packed["wv"], packed["bv"], packed["w_oc"], packed["b_oc"],
                packed["gamma"], packed["beta"])

    slab = pl.pallas_call(
        kernel,
        grid=(B // bc,),
        in_specs=in_specs,
        out_specs=pl.BlockSpec((bc, Sq, p_pad), lambda g: (g, 0, 0)),
        out_shape=jax.ShapeDtypeStruct((B, Sq, p_pad), jnp.float32),
        compiler_params=pltpu.CompilerParams(
            dimension_semantics=("parallel",)),
    )(*args)

    out = slab[..., :Dm]                      # LayerNorm(residual + linear_o)
    context = slab[..., Dm:2 * Dm]            # linear_context(ctx)
    attn_mean = slab[..., 2 * Dm:2 * Dm + Sk]  # mean attention over heads
    return out, attn_mean, context


def reference(query, key, value, mask, p, *, num_heads, d_k, d_v, ln_eps=1e-5):
    B, Sq, Dm = query.shape
    _, Sk, _ = key.shape
    Q = (query @ p["wq"] + p["bq"]).reshape(B, Sq, num_heads, d_k).transpose(0, 2, 1, 3)
    K = (key @ p["wk"] + p["bk"]).reshape(B, Sk, num_heads, d_k).transpose(0, 2, 3, 1)
    V = (value @ p["wv"] + p["bv"]).reshape(B, Sk, num_heads, d_v).transpose(0, 2, 1, 3)
    scores = (Q @ K) / np.sqrt(d_k)
    scores = jnp.where(mask[:, None] == 0.0, -1e18, scores)
    attn = jax.nn.softmax(scores, axis=-1)
    ctx = (attn @ V).transpose(0, 2, 1, 3).reshape(B, Sq, num_heads * d_v)
    indices = ctx @ p["wo"] + p["bo"]
    context = ctx @ p["wc"] + p["bc"]
    attn_mean = attn.mean(axis=1)
    indices = indices + query
    mu = indices.mean(-1, keepdims=True)
    var = ((indices - mu) ** 2).mean(-1, keepdims=True)
    out = (indices - mu) / jnp.sqrt(var + ln_eps) * p["gamma"] + p["beta"]
    return out, attn_mean, context


if __name__ == "__main__":
    # params: d_model=32, d_k=d_v=8, num_heads=4, dropout (inference -> identity)
    B, Sq, Sk, Dm, H, dk, dv = 2, 8, 8, 32, 4, 8, 8

    root = jax.random.PRNGKey(0)
    keys = jax.random.split(root, 16)

    def winit(k, fan_in, shape):
        return jax.random.normal(k, shape, jnp.float32) / np.sqrt(fan_in)

    params = {
        "wq": winit(keys[0], Dm, (Dm, H * dk)),
        "bq": winit(keys[1], Dm, (1, H * dk)),
        "wk": winit(keys[2], Dm, (Dm, H * dk)),
        "bk": winit(keys[3], Dm, (1, H * dk)),
        "wv": winit(keys[4], Dm, (Dm, H * dv)),
        "bv": winit(keys[5], Dm, (1, H * dv)),
        "wo": winit(keys[6], H * dv, (H * dv, Dm)),
        "bo": winit(keys[7], H * dv, (1, Dm)),
        "wc": winit(keys[8], H * dv, (H * dv, Dm)),
        "bc": winit(keys[9], H * dv, (1, Dm)),
        "gamma": jnp.ones((1, Dm), jnp.float32),   # nn.LayerNorm default init
        "beta": jnp.zeros((1, Dm), jnp.float32),
    }
    packed_f32 = pack_params(params, d_k=dk, dtype=jnp.float32)
    packed_bf16 = pack_params(params, d_k=dk, dtype=jnp.bfloat16)

    tol_f32 = dict(rtol=2e-3, atol=2e-3)    # exact-divide softmax, f32 matmuls
    tol_bf16 = dict(rtol=8e-2, atol=8e-2)   # bf16 operand rounding (~2^-8) through softmax+LN

    # Inputs.
    x = jax.random.normal(keys[10], (B, Sq, Dm), jnp.float32)
    mask_self = jnp.broadcast_to(jnp.tril(jnp.ones((Sq, Sq), jnp.float32)),
                                 (B, Sq, Sq))
    query = jax.random.normal(keys[11], (B, Sq, Dm), jnp.float32)
    key_in = jax.random.normal(keys[12], (B, Sk, Dm), jnp.float32)
    value = jax.random.normal(keys[13], (B, Sk, Dm), jnp.float32)
    mask = jnp.broadcast_to(jnp.tril(jnp.ones((Sq, Sk), jnp.float32)),
                            (B, Sq, Sk))

    # --- self-attention (query == key == value): fused-QKV path, f32 --------
    out, attn_mean, context = multihead_attention(
        x, x, x, mask_self, packed_f32, num_heads=H, d_k=dk, d_v=dv,
        fuse_qkv=True)
    jax.block_until_ready((out, attn_mean, context))
    ref_out, ref_attn, ref_ctx = reference(x, x, x, mask_self, params,
                                           num_heads=H, d_k=dk, d_v=dv)
    np.testing.assert_allclose(np.asarray(out), np.asarray(ref_out), **tol_f32)
    np.testing.assert_allclose(np.asarray(attn_mean), np.asarray(ref_attn), **tol_f32)
    np.testing.assert_allclose(np.asarray(context), np.asarray(ref_ctx), **tol_f32)

    # --- mutual attention (distinct q / k / v): general path, f32 -----------
    out2, attn2, ctx2 = multihead_attention(
        query, key_in, value, mask, packed_f32, num_heads=H, d_k=dk, d_v=dv)
    jax.block_until_ready((out2, attn2, ctx2))
    ref2 = reference(query, key_in, value, mask, params,
                     num_heads=H, d_k=dk, d_v=dv)
    for got, want in zip((out2, attn2, ctx2), ref2):
        np.testing.assert_allclose(np.asarray(got), np.asarray(want), **tol_f32)

    # --- batch-chunked grid (v7x two-TensorCore style), f32 ------------------
    out3, attn3, ctx3 = multihead_attention(
        query, key_in, value, mask, packed_f32, num_heads=H, d_k=dk, d_v=dv,
        batch_chunk=1)
    jax.block_until_ready((out3, attn3, ctx3))
    for got, want in zip((out3, attn3, ctx3), ref2):
        np.testing.assert_allclose(np.asarray(got), np.asarray(want), **tol_f32)

    # --- bf16 MXU-operand path (default packing), both attention modes ------
    out4, attn4, ctx4 = multihead_attention(
        x, x, x, mask_self, packed_bf16, num_heads=H, d_k=dk, d_v=dv,
        fuse_qkv=True)
    jax.block_until_ready((out4, attn4, ctx4))
    for got, want in zip((out4, attn4, ctx4), (ref_out, ref_attn, ref_ctx)):
        np.testing.assert_allclose(np.asarray(got), np.asarray(want), **tol_bf16)

    out5, attn5, ctx5 = multihead_attention(
        query, key_in, value, mask, packed_bf16, num_heads=H, d_k=dk, d_v=dv)
    jax.block_until_ready((out5, attn5, ctx5))
    for got, want in zip((out5, attn5, ctx5), ref2):
        np.testing.assert_allclose(np.asarray(got), np.asarray(want), **tol_bf16)

    print("KERNEL_OK")
</pallas_src>

<mosaic_0001>
module attributes {stable_mosaic.version = 11 : i64} {
  func.func @mha_kernel_fused(%arg0: i32, %arg1: memref<2x8x32xf32, #tpu.memory_space<vmem>>, %arg2: memref<2x8x8xf32, #tpu.memory_space<vmem>>, %arg3: memref<32x96xf32, #tpu.memory_space<vmem>>, %arg4: memref<1x96xf32, #tpu.memory_space<vmem>>, %arg5: memref<32x64xf32, #tpu.memory_space<vmem>>, %arg6: memref<1x64xf32, #tpu.memory_space<vmem>>, %arg7: memref<1x32xf32, #tpu.memory_space<vmem>>, %arg8: memref<1x32xf32, #tpu.memory_space<vmem>>, %arg9: memref<2x8x128xf32, #tpu.memory_space<vmem>>) attributes {dimension_semantics = [#tpu.dimension_semantics<parallel>], iteration_bounds = array<i64: 1>, scalar_prefetch = 0 : i64, scratch_operands = 0 : i64, tpu.core_type = #tpu.core_type<tc>, window_params = [{transform_indices = @transform_0, window_bounds = array<i64: 2, 8, 32>}, {transform_indices = @transform_1, window_bounds = array<i64: 2, 8, 8>}, {pipeline_mode = #tpu.pipeline_mode<synchronous>, transform_indices = @transform_2, window_bounds = array<i64: 32, 96>}, {pipeline_mode = #tpu.pipeline_mode<synchronous>, transform_indices = @transform_3, window_bounds = array<i64: 1, 96>}, {pipeline_mode = #tpu.pipeline_mode<synchronous>, transform_indices = @transform_4, window_bounds = array<i64: 32, 64>}, {pipeline_mode = #tpu.pipeline_mode<synchronous>, transform_indices = @transform_5, window_bounds = array<i64: 1, 64>}, {pipeline_mode = #tpu.pipeline_mode<synchronous>, transform_indices = @transform_6, window_bounds = array<i64: 1, 32>}, {pipeline_mode = #tpu.pipeline_mode<synchronous>, transform_indices = @transform_7, window_bounds = array<i64: 1, 32>}, {transform_indices = @transform_8, window_bounds = array<i64: 2, 8, 128>}]} {
    %c0 = arith.constant 0 : index
    %c0_0 = arith.constant 0 : index
    %c0_1 = arith.constant 0 : index
    %0 = vector.load %arg1[%c0, %c0_0, %c0_1] : memref<2x8x32xf32, #tpu.memory_space<vmem>>, vector<2x8x32xf32>
    %1 = vector.shape_cast %0 : vector<2x8x32xf32> to vector<16x32xf32>
    %c0_2 = arith.constant 0 : index
    %c0_3 = arith.constant 0 : index
    %2 = vector.load %arg3[%c0_2, %c0_3] : memref<32x96xf32, #tpu.memory_space<vmem>>, vector<32x96xf32>
    %cst = arith.constant dense<0.000000e+00> : vector<16x96xf32>
    %3 = tpu.matmul %1, %2, %cst {dimension_numbers = #tpu.dot_dimension_numbers<[1], [0], [0], [1], [0, 0, 1, 1], [], []>} : vector<16x32xf32>, vector<32x96xf32>, vector<16x96xf32> -> vector<16x96xf32>
    %c0_4 = arith.constant 0 : index
    %c0_5 = arith.constant 0 : index
    %4 = vector.load %arg4[%c0_4, %c0_5] : memref<1x96xf32, #tpu.memory_space<vmem>>, vector<1x96xf32>
    %5 = vector.broadcast %4 : vector<1x96xf32> to vector<16x96xf32>
    %6 = arith.addf %3, %5 : vector<16x96xf32>
    %7 = vector.extract_strided_slice %6 {offsets = [0, 0], sizes = [16, 32], strides = [1, 1]} : vector<16x96xf32> to vector<16x32xf32>
    %8 = vector.extract_strided_slice %6 {offsets = [0, 32], sizes = [16, 32], strides = [1, 1]} : vector<16x96xf32> to vector<16x32xf32>
    %9 = vector.extract_strided_slice %6 {offsets = [0, 64], sizes = [16, 32], strides = [1, 1]} : vector<16x96xf32> to vector<16x32xf32>
    %c0_6 = arith.constant 0 : index
    %c0_7 = arith.constant 0 : index
    %c0_8 = arith.constant 0 : index
    %10 = vector.load %arg2[%c0_6, %c0_7, %c0_8] : memref<2x8x8xf32, #tpu.memory_space<vmem>>, vector<2x8x8xf32>
    %c0_9 = arith.constant 0 : index
    %c0_10 = arith.constant 0 : index
    %11 = vector.load %arg5[%c0_9, %c0_10] : memref<32x64xf32, #tpu.memory_space<vmem>>, vector<32x64xf32>
    %c0_11 = arith.constant 0 : index
    %c0_12 = arith.constant 0 : index
    %12 = vector.load %arg6[%c0_11, %c0_12] : memref<1x64xf32, #tpu.memory_space<vmem>>, vector<1x64xf32>
    %c0_13 = arith.constant 0 : index
    %c0_14 = arith.constant 0 : index
    %13 = vector.load %arg7[%c0_13, %c0_14] : memref<1x32xf32, #tpu.memory_space<vmem>>, vector<1x32xf32>
    %c0_15 = arith.constant 0 : index
    %c0_16 = arith.constant 0 : index
    %14 = vector.load %arg8[%c0_15, %c0_16] : memref<1x32xf32, #tpu.memory_space<vmem>>, vector<1x32xf32>
    %15 = vector.shape_cast %7 : vector<16x32xf32> to vector<16x4x8xf32>
    %16 = tpu.transpose %15, [1, 0, 2] : vector<16x4x8xf32> -> vector<4x16x8xf32>
    %17 = vector.shape_cast %16 : vector<4x16x8xf32> to vector<4x2x8x8xf32>
    %18 = vector.shape_cast %17 : vector<4x2x8x8xf32> to vector<8x8x8xf32>
    %19 = vector.shape_cast %8 : vector<16x32xf32> to vector<16x4x8xf32>
    %20 = tpu.transpose %19, [1, 0, 2] : vector<16x4x8xf32> -> vector<4x16x8xf32>
    %21 = vector.shape_cast %20 : vector<4x16x8xf32> to vector<4x2x8x8xf32>
    %22 = vector.shape_cast %21 : vector<4x2x8x8xf32> to vector<8x8x8xf32>
    %23 = vector.shape_cast %9 : vector<16x32xf32> to vector<16x4x8xf32>
    %24 = tpu.transpose %23, [1, 0, 2] : vector<16x4x8xf32> -> vector<4x16x8xf32>
    %25 = vector.shape_cast %24 : vector<4x16x8xf32> to vector<4x2x8x8xf32>
    %26 = vector.shape_cast %25 : vector<4x2x8x8xf32> to vector<8x8x8xf32>
    %cst_17 = arith.constant 0.000000e+00 : f32
    %27 = vector.broadcast %cst_17 : f32 to vector<2x8x8xf32>
    %28 = arith.cmpf oeq, %10, %27 : vector<2x8x8xf32>
    %cst_18 = arith.constant -9.99999984E+17 : f32
    %cst_19 = arith.constant 0.000000e+00 : f32
    %29 = vector.broadcast %cst_18 : f32 to vector<2x8x8xf32>
    %30 = vector.broadcast %cst_19 : f32 to vector<2x8x8xf32>
    %31 = arith.select %28, %29, %30 : vector<2x8x8xi1>, vector<2x8x8xf32>
    %32 = vector.shape_cast %31 : vector<2x8x8xf32> to vector<1x2x8x8xf32>
    %33 = vector.shape_cast %32 : vector<1x2x8x8xf32> to vector<1x2x8x8xf32>
    %34 = vector.broadcast %33 : vector<1x2x8x8xf32> to vector<4x2x8x8xf32>
    %35 = vector.shape_cast %34 : vector<4x2x8x8xf32> to vector<8x8x8xf32>
    "tpu.trace_start"() <{level = 10 : i32, message = "gqd,gkd->gqk"}> : () -> ()
    %cst_20 = arith.constant dense<0.000000e+00> : vector<8x8x8xf32>
    %36 = tpu.matmul %18, %22, %cst_20 {dimension_numbers = #tpu.dot_dimension_numbers<[2], [2], [1], [1], [0, 0, 0, 1, 1, 1], [0], [0]>} : vector<8x8x8xf32>, vector<8x8x8xf32>, vector<8x8x8xf32> -> vector<8x8x8xf32>
    "tpu.trace_stop"() : () -> ()
    %37 = arith.addf %36, %35 : vector<8x8x8xf32>
    %cst_21 = arith.constant dense<0xFF800000> : vector<8x8xf32>
    %38 = vector.multi_reduction <maximumf>, %37, %cst_21 [2] : vector<8x8x8xf32> to vector<8x8xf32>
    %39 = vector.shape_cast %38 : vector<8x8xf32> to vector<8x8x1xf32>
    %40 = vector.broadcast %39 : vector<8x8x1xf32> to vector<8x8x8xf32>
    %41 = arith.subf %37, %40 : vector<8x8x8xf32>
    %42 = math.exp %41 : vector<8x8x8xf32>
    %cst_22 = arith.constant dense<0.000000e+00> : vector<8x8xf32>
    %43 = vector.multi_reduction <add>, %42, %cst_22 [2] : vector<8x8x8xf32> to vector<8x8xf32>
    %44 = vector.shape_cast %43 : vector<8x8xf32> to vector<8x8x1xf32>
    %45 = vector.broadcast %44 : vector<8x8x1xf32> to vector<8x8x8xf32>
    %46 = arith.divf %42, %45 : vector<8x8x8xf32>
    "tpu.trace_start"() <{level = 10 : i32, message = "gqk,gkd->gqd"}> : () -> ()
    %cst_23 = arith.constant dense<0.000000e+00> : vector<8x8x8xf32>
    %47 = tpu.matmul %46, %26, %cst_23 {dimension_numbers = #tpu.dot_dimension_numbers<[2], [1], [1], [2], [0, 0, 0, 1, 1, 2], [0], [0]>} : vector<8x8x8xf32>, vector<8x8x8xf32>, vector<8x8x8xf32> -> vector<8x8x8xf32>
    "tpu.trace_stop"() : () -> ()
    %48 = vector.shape_cast %47 : vector<8x8x8xf32> to vector<4x16x8xf32>
    %49 = tpu.transpose %48, [1, 0, 2] : vector<4x16x8xf32> -> vector<16x4x8xf32>
    %50 = vector.shape_cast %49 : vector<16x4x8xf32> to vector<16x32xf32>
    %51 = vector.shape_cast %46 : vector<8x8x8xf32> to vector<4x2x8x8xf32>
    %cst_24 = arith.constant dense<0.000000e+00> : vector<2x8x8xf32>
    %52 = vector.multi_reduction <add>, %51, %cst_24 [0] : vector<4x2x8x8xf32> to vector<2x8x8xf32>
    %cst_25 = arith.constant 4.000000e+00 : f32
    %53 = vector.broadcast %cst_25 : f32 to vector<2x8x8xf32>
    %54 = arith.divf %52, %53 : vector<2x8x8xf32>
    %cst_26 = arith.constant dense<0.000000e+00> : vector<16x64xf32>
    %55 = tpu.matmul %50, %11, %cst_26 {dimension_numbers = #tpu.dot_dimension_numbers<[1], [0], [0], [1], [0, 0, 1, 1], [], []>} : vector<16x32xf32>, vector<32x64xf32>, vector<16x64xf32> -> vector<16x64xf32>
    %56 = vector.broadcast %12 : vector<1x64xf32> to vector<16x64xf32>
    %57 = arith.addf %55, %56 : vector<16x64xf32>
    %58 = vector.extract_strided_slice %57 {offsets = [0, 0], sizes = [16, 32], strides = [1, 1]} : vector<16x64xf32> to vector<16x32xf32>
    %59 = vector.extract_strided_slice %57 {offsets = [0, 32], sizes = [16, 32], strides = [1, 1]} : vector<16x64xf32> to vector<16x32xf32>
    %60 = arith.addf %58, %1 : vector<16x32xf32>
    %cst_27 = arith.constant dense<0.000000e+00> : vector<16xf32>
    %61 = vector.multi_reduction <add>, %60, %cst_27 [1] : vector<16x32xf32> to vector<16xf32>
    %62 = vector.shape_cast %61 : vector<16xf32> to vector<16x1xf32>
    %cst_28 = arith.constant 3.200000e+01 : f32
    %63 = vector.broadcast %cst_28 : f32 to vector<16x1xf32>
    %64 = arith.divf %62, %63 : vector<16x1xf32>
    %65 = vector.broadcast %64 : vector<16x1xf32> to vector<16x32xf32>
    %66 = arith.subf %60, %65 : vector<16x32xf32>
    %67 = arith.mulf %66, %66 : vector<16x32xf32>
    %cst_29 = arith.constant dense<0.000000e+00> : vector<16xf32>
    %68 = vector.multi_reduction <add>, %67, %cst_29 [1] : vector<16x32xf32> to vector<16xf32>
    %69 = vector.shape_cast %68 : vector<16xf32> to vector<16x1xf32>
    %cst_30 = arith.constant 3.200000e+01 : f32
    %70 = vector.broadcast %cst_30 : f32 to vector<16x1xf32>
    %71 = arith.divf %69, %70 : vector<16x1xf32>
    %72 = vector.broadcast %64 : vector<16x1xf32> to vector<16x32xf32>
    %73 = arith.subf %60, %72 : vector<16x32xf32>
    %cst_31 = arith.constant 9.99999974E-6 : f32
    %74 = vector.broadcast %cst_31 : f32 to vector<16x1xf32>
    %75 = arith.addf %71, %74 : vector<16x1xf32>
    %76 = math.rsqrt %75 : vector<16x1xf32>
    %77 = vector.broadcast %76 : vector<16x1xf32> to vector<16x32xf32>
    %78 = arith.mulf %73, %77 : vector<16x32xf32>
    %79 = vector.broadcast %13 : vector<1x32xf32> to vector<16x32xf32>
    %80 = arith.mulf %78, %79 : vector<16x32xf32>
    %81 = vector.broadcast %14 : vector<1x32xf32> to vector<16x32xf32>
    %82 = arith.addf %80, %81 : vector<16x32xf32>
    %83 = vector.shape_cast %54 : vector<2x8x8xf32> to vector<16x8xf32>
    %cst_32 = arith.constant 0.000000e+00 : f32
    %84 = vector.broadcast %cst_32 : f32 to vector<16x56xf32>
    %85 = tpu.concatenate %82, %59, %83, %84 in 1 : vector<16x32xf32>, vector<16x32xf32>, vector<16x8xf32>, vector<16x56xf32> -> vector<16x128xf32>
    %86 = vector.shape_cast %85 : vector<16x128xf32> to vector<2x8x128xf32>
    %c0_33 = arith.constant 0 : index
    %c0_34 = arith.constant 0 : index
    %c0_35 = arith.constant 0 : index
    %87 = vector.load %arg9[%c0_33, %c0_34, %c0_35] : memref<2x8x128xf32, #tpu.memory_space<vmem>>, vector<2x8x128xf32>
    tpu.vector_store %arg9[%c0_33, %c0_34, %c0_35], %86 {strides = array<i32>} : memref<2x8x128xf32, #tpu.memory_space<vmem>>, vector<2x8x128xf32>,
    return
  }
  func.func @transform_0(%arg0: i32) -> (i32, i32, i32) {
    %c0_i32 = arith.constant 0 : i32
    %c0_i32_0 = arith.constant 0 : i32
    %c0_i32_1 = arith.constant 0 : i32
    return %arg0, %c0_i32, %c0_i32_0 : i32, i32, i32
  }
  func.func @transform_1(%arg0: i32) -> (i32, i32, i32) {
    %c0_i32 = arith.constant 0 : i32
    %c0_i32_0 = arith.constant 0 : i32
    %c0_i32_1 = arith.constant 0 : i32
    return %arg0, %c0_i32, %c0_i32_0 : i32, i32, i32
  }
  func.func @transform_2(%arg0: i32) -> (i32, i32) {
    %c0_i32 = arith.constant 0 : i32
    %c0_i32_0 = arith.constant 0 : i32
    %c0_i32_1 = arith.constant 0 : i32
    return %c0_i32, %c0_i32_0 : i32, i32
  }
  func.func @transform_3(%arg0: i32) -> (i32, i32) {
    %c0_i32 = arith.constant 0 : i32
    %c0_i32_0 = arith.constant 0 : i32
    %c0_i32_1 = arith.constant 0 : i32
    return %c0_i32, %c0_i32_0 : i32, i32
  }
  func.func @transform_4(%arg0: i32) -> (i32, i32) {
    %c0_i32 = arith.constant 0 : i32
    %c0_i32_0 = arith.constant 0 : i32
    %c0_i32_1 = arith.constant 0 : i32
    return %c0_i32, %c0_i32_0 : i32, i32
  }
  func.func @transform_5(%arg0: i32) -> (i32, i32) {
    %c0_i32 = arith.constant 0 : i32
    %c0_i32_0 = arith.constant 0 : i32
    %c0_i32_1 = arith.constant 0 : i32
    return %c0_i32, %c0_i32_0 : i32, i32
  }
  func.func @transform_6(%arg0: i32) -> (i32, i32) {
    %c0_i32 = arith.constant 0 : i32
    %c0_i32_0 = arith.constant 0 : i32
    %c0_i32_1 = arith.constant 0 : i32
    return %c0_i32, %c0_i32_0 : i32, i32
  }
  func.func @transform_7(%arg0: i32) -> (i32, i32) {
    %c0_i32 = arith.constant 0 : i32
    %c0_i32_0 = arith.constant 0 : i32
    %c0_i32_1 = arith.constant 0 : i32
    return %c0_i32, %c0_i32_0 : i32, i32
  }
  func.func @transform_8(%arg0: i32) -> (i32, i32, i32) {
    %c0_i32 = arith.constant 0 : i32
    %c0_i32_0 = arith.constant 0 : i32
    %c0_i32_1 = arith.constant 0 : i32
    return %arg0, %c0_i32, %c0_i32_0 : i32, i32, i32
  }
}

</mosaic_0001>

<bundles_post_ra>
// kernel: tpu_custom_call.1
= control target key start
LH: loop header
LB: loop body
LE: loop exit
PB: predicated region body
PF: predicated region fallthrough
CT: control target
= control target key end

     0   :  { %13 = vsyncpa [#allocation3], 0  ;;  %s2835_s0 = inlined_call_operand.hbm [shape: f32[2,8,32], index: 0, kind: input, shape index: {}]   ;;  %s2836_s1 = inlined_call_operand.hbm [shape: f32[2,8,8], index: 1, kind: input, shape index: {}]   ;;  %s2837_s2 = inlined_call_operand.hbm [shape: f32[32,96], index: 2, kind: input, shape index: {}]   ;;  %s2838_s3 = inlined_call_operand.vmem [shape: f32[1,96], index: 3, kind: input, shape index: {}]   ;;  %s2839_s4 = inlined_call_operand.hbm [shape: f32[32,64], index: 4, kind: input, shape index: {}]   ;;  %s2840_s5 = inlined_call_operand.vmem [shape: f32[1,64], index: 5, kind: input, shape index: {}]   ;;  %s2841_s6 = inlined_call_operand.vmem [shape: f32[1,32], index: 6, kind: input, shape index: {}]   ;;  %s2842_s7 = inlined_call_operand.vmem [shape: f32[1,32], index: 7, kind: input, shape index: {}]   ;;  %s2843_s8 = inlined_call_operand.hbm [shape: f32[2,8,128], index: 8, kind: output, shape index: {}]  }
   0x1   :  { %14 = vsyncpa [#allocation6], 0 }
   0x2   :  { %15 = vsyncpa [#allocation9], 0 }
   0x3   :  { %16 = vsyncpa [#allocation4], 0  ;;  %s34_s29 = sshll.u32 %s2836_s1, 4  ;;  %s2110_s30 = smov [#allocation5]   ;;  %s35_s29 = int_to_ptr.hbm [resolvable:$true] %s34_s29 }
   0x4   :  { %s36_s9 = sshll.u32 %s2110_s30, 4  ;;  %s21_s12 = sshll.u32 %s2835_s0, 4  ;;  %s37_s9 = int_to_ptr.vmem [resolvable:$true] %s36_s9  ;;  %s22_s12 = int_to_ptr.hbm [resolvable:$true] %s21_s12 }
   0x5   :  { %s2111_s13 = smov 128   ;;  %s2112_s14 = smov 8  }
   0x6   :  { %42 = dma.hbm_to_vmem [thread:$0]  %s35_s29, 256, %s37_s9, [#allocation6], %s2111_s13, %s2111_s13, %s2112_s14  }
   0x7   :  { %s2113_s15 = smov [#allocation2]   ;;  %s47_s1 = sshll.u32 %s2837_s2, 4  ;;  %s48_s1 = int_to_ptr.hbm [resolvable:$true] %s47_s1 }
   0x8   :  { %s23_s16 = sshll.u32 %s2113_s15, 4  ;;  %s62_s20 = sshll.u32 %s2839_s4, 4  ;;  %s24_s16 = int_to_ptr.vmem [resolvable:$true] %s23_s16  ;;  %s63_s20 = int_to_ptr.hbm [resolvable:$true] %s62_s20 }
   0x9   :  { %29 = dma.hbm_to_vmem [thread:$0]  %s22_s12, 256, %s24_s16, [#allocation3], %s2111_s13, %s2111_s13, %s2112_s14  }
   0xa   :  { %s2114_s21 = smov [#allocation7]   ;;  %s2115_s23 = smov [#allocation8]  }
   0xb   :  { %s49_s22 = sshll.u32 %s2114_s21, 4  ;;  %s64_s2 = sshll.u32 %s2115_s23, 4  ;;  %s50_s22 = int_to_ptr.vmem [resolvable:$true] %s49_s22  ;;  %s65_s2 = int_to_ptr.vmem [resolvable:$true] %s64_s2 }
   0xc   :  { %55 = dma.hbm_to_vmem [thread:$0]  %s48_s1, 512, %s50_s22, [#allocation6], %s2111_s13, %s2111_s13, %s2112_s14  }
   0xd   :  { %70 = dma.hbm_to_vmem [thread:$0]  %s63_s20, 512, %s65_s2, [#allocation9], %s2111_s13, %s2111_s13, %s2112_s14  }
   0xe   :  { %2102 = dma.done.wait [#allocation3], 256  }
   0xf   :  { %2103 = vsyncadd [#allocation3], 4294967040 }
  0x10   :  { %2104 = dma.done.wait [#allocation6], 768  }
  0x11   :  { %2105 = vsyncadd [#allocation6], 4294966528 }
  0x12   :  { %2106 = dma.done.wait [#allocation9], 512  }
  0x13   :  { %2107 = vsyncadd [#allocation9], 4294966784  ;;  %v98_v0 = vld [vmem:[#allocation7 + $0x18] sm:$0xff]  ;;  %v97_v1 = vld [vmem:[#allocation7 + $0x10] sm:$0xff]  ;;  %vm103_vm0 = vcmask 261120   ;;  %s2116_s25 = smov 112  }
  0x14   :  { %122 = vmatpush.msra.mxu0 %v98_v0  ;;  %v96_v2 = vld [vmem:[#allocation7 + $0x8] sm:$0xff]  ;;  %v95_v3 = vld [vmem:[#allocation7] sm:$0xff]  ;;  %s2117_s26 = smov 104   ;;  %s2118_s27 = smov 120   ;;  %v2120_v12 = vmov 1983009808  }
  0x15   :  { %v93_v4 = vld [vmem:[#allocation2] sm:$0xff]  ;;  %v94_v5 = vld [vmem:[#allocation2 + $0x8] sm:$0xff]  ;;  %v168_v13 = vunpack.c.l.s4 %v2120_v12  ;;  %vm163_vm1 = vcmask 1047556   ;;  %v2121_v27 = vmov 1934713408   ;;  %s2122_s28 = smov 64  }
  0x16   :  { %123 = vmatpush.msra.mxu0 %v97_v1  ;;  %v1936_v6 = vld [vmem:[%s2838_s3] ss:$0 sm:$0xff]  ;;  %s2119_s3 = smov 96   ;;  %v192_v28 = vunpack.c.l.s4 %v2121_v27  ;;  %vm875_vm2 = vcmask 64512   ;;  %s2125_s29 = smov 16  }
  0x17   :  { %v2233_v21 = vunpack.c.0.s8 %v168_v13  ;;  %s2126_s30 = smov 24   ;;  %s1854_s18 = sshll.u32 %s2843_s8, 4  ;;  %s1855_s18 = int_to_ptr.hbm [resolvable:$true] %s1854_s18 }
  0x18   :  { %124 = vmatpush.msra.mxu0 %v96_v2  ;;  %v2251_v35 = vunpack.c.0.s8 %v192_v28 }
  0x1a   :  { %125 = vmatpush.msra.mxu0 %v95_v3 }
  0x1b   :  { %1869 = vmatmul.msk.f32.vlgmr.msra.gmra.mxu0 %vm103_vm0, %v93_v4 }
  0x23   :  { %1870 = vmatmul.msk.f32.gmra.mxu0 %vm103_vm0, %v94_v5 }
  0x98   :  { %v127_v7 = vpop.f32.mrf.mxu0 }
  0x99   :  { %v2203_v8 = vadd.f32 %v1936_v6, %v127_v7 }
  0x9b   :  { %150 = vrot.lane.b32.xlu2 %v2203_v8, %s2116_s25  ;;  %v165_v15 = vrot.slane %v2203_v8, 4 }
  0xa0   :  { %v130_v9 = vpop.f32.mrf.mxu0 }
  0xa1   :  { %v2206_v10 = vadd.f32 %v1936_v6, %v130_v9 }
  0xa3   :  { %158 = vrot.lane.b32.xlu1 %v2206_v10, %s2117_s26  ;;  %146 = vrot.lane.b32.xlu0 %v2206_v10, %s2118_s27  ;;  %v221_v34 = vrot.slane %v2206_v10, 4 }
  0xa4   :  { %156 = vrot.lane.b32.xlu2 %v2203_v8, %s2117_s26 }
  0xab   :  { %152 = vrot.lane.b32.xlu0 %v2206_v10, %s2116_s25  ;;  %144 = vrot.lane.b32.xlu1 %v2203_v8, %s2118_s27 }
  0xb3   :  { %385 = vrot.lane.b32.xlu0 %v2206_v10, %s2119_s3  ;;  %383 = vrot.lane.b32.xlu1 %v2203_v8, %s2119_s3 }
  0xf5   :  { %v2217_v11 = vpop.permute.xlu2 %150 }
  0xf6   :  { %v162_v14 = vrot.slane %v2217_v11, 4  ;;  %v166_v22 = vsel %vm163_vm1, %v2217_v11, %v165_v15 }
  0xf7   :  { %v174_v29 = vperm.slane %v166_v22, %v2233_v21 }
  0xf8   :  { %v164_v25 = vsel %vm163_vm1, %v162_v14, %v2203_v8 }
  0xf9   :  { %v170_v31 = vperm.slane %v164_v25, %v2233_v21  ;;  %v201_v42 = vrot.slane %v174_v29, 4 }
  0xfb   :  { %v189_v46 = vrot.slane %v170_v31, 4 }
  0xfe   :  { %v2243_v26 = vpop.permute.xlu2 %156 }
  0xff   :  { %v175_v32 = vrot.slane %v2243_v26, 4 }
 0x115   :  { %v2221_v16 = vpop.permute.xlu1 %158  ;;  %v2223_v17 = vpop.permute.xlu0 %146 }
 0x116   :  { %v231_v18 = vrot.slane %v2221_v16, 4  ;;  %v233_v19 = vrot.slane %v2223_v17, 4  ;;  %397 = vrot.lane.b32.xlu0 %v2221_v16, %s2119_s3  ;;  %389 = vrot.lane.b32.xlu1 %v2223_v17, %s2119_s3  ;;  %v1931_v20 = vpack.i.bf16 %v2223_v17, %v2221_v16 }
 0x118   :  { %v232_v23 = vsel %vm163_vm1, %v231_v18, %v2223_v17  ;;  %v234_v24 = vsel %vm163_vm1, %v2221_v16, %v233_v19 }
 0x119   :  { %v242_v30 = vperm.slane %v234_v24, %v2233_v21  ;;  %v238_v33 = vperm.slane %v232_v23, %v2233_v21 }
 0x11b   :  { %v255_v43 = vrot.slane %v242_v30, 4  ;;  %v243_v47 = vrot.slane %v238_v33, 4 }
 0x11d   :  { %v2253_v36 = vpop.permute.xlu0 %152  ;;  %v145_v37 = vpop.permute.xlu1 %144 }
 0x11e   :  { %v219_v38 = vrot.slane %v2253_v36, 4  ;;  %v222_v39 = vsel %vm163_vm1, %v2253_v36, %v221_v34  ;;  %v176_v40 = vsel %vm163_vm1, %v175_v32, %v145_v37  ;;  %v177_v41 = vrot.slane %v145_v37, 4  ;;  %393 = vrot.lane.b32.xlu2 %v2253_v36, %s2119_s3  ;;  %391 = vrot.lane.b32.xlu0 %v2217_v11, %s2119_s3 }
 0x11f   :  { %v230_v44 = vperm.slane %v222_v39, %v2233_v21  ;;  %v182_v45 = vperm.slane %v176_v40, %v2233_v21  ;;  %395 = vrot.lane.b32.xlu1 %v2243_v26, %s2119_s3  ;;  %v1916_v57 = vpack.i.bf16 %v145_v37, %v2203_v8 }
 0x120   :  { %v220_v48 = vsel %vm163_vm1, %v219_v38, %v2206_v10  ;;  %v178_v49 = vsel %vm163_vm1, %v2243_v26, %v177_v41 }
 0x121   :  { %v226_v50 = vperm.slane %v220_v48, %v2233_v21  ;;  %v256_v51 = vsel %vm163_vm1, %v255_v43, %v230_v44  ;;  %v257_v52 = vrot.slane %v230_v44, 4  ;;  %v186_v53 = vperm.slane %v178_v49, %v2233_v21 }
 0x122   :  { %v262_v54 = vperm.slane %v256_v51, %v2251_v35  ;;  %v187_v55 = vrot.slane %v182_v45, 4  ;;  %v190_v56 = vsel %vm163_vm1, %v182_v45, %v189_v46 }
 0x123   :  { %v244_v58 = vsel %vm163_vm1, %v243_v47, %v226_v50  ;;  %v245_v59 = vrot.slane %v226_v50, 4  ;;  %v258_v60 = vsel %vm163_vm1, %v242_v30, %v257_v52  ;;  %v198_v61 = vperm.slane %v190_v56, %v2251_v35 }
 0x124   :  { %v250_v62 = vperm.slane %v244_v58, %v2251_v35  ;;  %v266_v63 = vperm.slane %v258_v60, %v2251_v35  ;;  %v271_v0 = vrot.slane %v262_v54, 4  ;;  %v188_v1 = vsel %vm163_vm1, %v187_v55, %v170_v31 }
 0x125   :  { %v246_v2 = vsel %vm163_vm1, %v238_v33, %v245_v59  ;;  %v194_v3 = vperm.slane %v188_v1, %v2251_v35  ;;  %v199_v4 = vrot.slane %v186_v53, 4  ;;  %v202_v5 = vsel %vm163_vm1, %v186_v53, %v201_v42 }
 0x126   :  { %v254_v6 = vperm.slane %v246_v2, %v2251_v35  ;;  %v273_v7 = vrot.slane %v266_v63, 4  ;;  %v210_v8 = vperm.slane %v202_v5, %v2251_v35  ;;  %1917 = vrot.lane.b32.xlu0 %v1916_v57, %s2122_s28  ;;  %387 = vrot.lane.b32.xlu2 %v145_v37, %s2119_s3  ;;  %v272_v9 = vsel %vm163_vm1, 0.0, %v271_v0 }
 0x127   :  { %v200_v12 = vsel %vm163_vm1, %v199_v4, %v174_v29  ;;  %v213_v13 = vrot.slane %v198_v61, 4  ;;  %v211_v18 = vrot.slane %v194_v3, 4  ;;  %v267_v24 = vrot.slane %v250_v62, 4 }
 0x128   :  { %v274_v14 = vsel %vm163_vm1, 0.0, %v273_v7  ;;  %v206_v15 = vperm.slane %v200_v12, %v2251_v35  ;;  %v217_v19 = vrot.slane %v210_v8, 4  ;;  %v269_v25 = vrot.slane %v254_v6, 4 }
 0x129   :  { %v345_v22 = vrot.slane %v274_v14, 4  ;;  %v214_v23 = vsel %vm163_vm1, 0.0, %v213_v13  ;;  %v340_v31 = vsel %vm163_vm1, %v273_v7, %v262_v54  ;;  %v268_v29 = vsel %vm163_vm1, 0.0, %v267_v24 }
 0x12a   :  { %v215_v27 = vrot.slane %v206_v15, 4  ;;  %v218_v28 = vsel %vm163_vm1, 0.0, %v217_v19  ;;  %v280_v30 = vrot.slane %v214_v23, 4  ;;  %v270_v33 = vsel %vm163_vm1, 0.0, %v269_v25 }
 0x12b   :  { %v291_v32 = vrot.slane %v218_v28, 4  ;;  %v329_v34 = vsel %vm163_vm1, %v269_v25, %v250_v62  ;;  %v334_v38 = vrot.slane %v270_v33, 4  ;;  %v344_v39 = vperm.slane %v340_v31, %v2233_v21 }
 0x12c   :  { %v333_v37 = vperm.slane %v329_v34, %v2233_v21  ;;  %v346_v40 = vsel %vm163_vm1, %v345_v22, %v272_v9  ;;  %v212_v42 = vsel %vm163_vm1, 0.0, %v211_v18  ;;  %v216_v43 = vsel %vm163_vm1, 0.0, %v215_v27 }
 0x12d   :  { %v350_v41 = vperm.slane %v346_v40, %v2233_v21  ;;  %v275_v44 = vsel %vm163_vm1, %v213_v13, %v194_v3  ;;  %v335_v45 = vsel %vm163_vm1, %v334_v38, %v268_v29  ;;  %v365_v47 = vrot.slane %v344_v39, 4  ;;  %v386_v40 = vpop.permute.xlu0 %385 }
 0x12e   :  { %v353_v46 = vrot.slane %v333_v37, 4  ;;  %v279_v48 = vperm.slane %v275_v44, %v2233_v21  ;;  %v339_v49 = vperm.slane %v335_v45, %v2233_v21  ;;  %v281_v51 = vsel %vm163_vm1, %v280_v30, %v212_v42 }
 0x12f   :  { %v363_v50 = vrot.slane %v350_v41, 4  ;;  %v286_v52 = vsel %vm163_vm1, %v217_v19, %v206_v15  ;;  %v366_v53 = vsel %vm163_vm1, %v350_v41, %v365_v47  ;;  %v285_v54 = vperm.slane %v281_v51, %v2233_v21  ;;  %v384_v41 = vpop.permute.xlu1 %383 }
 0x130   :  { %v290_v55 = vperm.slane %v286_v52, %v2233_v21  ;;  %v292_v56 = vsel %vm163_vm1, %v291_v32, %v216_v43  ;;  %v354_v57 = vsel %vm163_vm1, %v339_v49, %v353_v46  ;;  %v374_v58 = vperm.slane %v366_v53, %v2251_v35 }
 0x131   :  { %v351_v59 = vrot.slane %v339_v49, 4  ;;  %v364_v60 = vsel %vm163_vm1, %v363_v50, %v344_v39  ;;  %v362_v61 = vperm.slane %v354_v57, %v2251_v35  ;;  %v296_v63 = vperm.slane %v292_v56, %v2233_v21 }
 0x132   :  { %v370_v62 = vperm.slane %v364_v60, %v2251_v35  ;;  %v297_v0 = vrot.slane %v285_v54, 4  ;;  %v379_v1 = vrot.slane %v374_v58, 4  ;;  %v299_v3 = vrot.slane %v279_v48, 4 }
 0x133   :  { %v352_v2 = vsel %vm163_vm1, %v351_v59, %v333_v37  ;;  %v311_v4 = vrot.slane %v290_v55, 4  ;;  %v381_v5 = vrot.slane %v362_v61, 4  ;;  %v309_v13 = vrot.slane %v296_v63, 4 }
 0x134   :  { %v358_v6 = vperm.slane %v352_v2, %v2251_v35  ;;  %v375_v7 = vrot.slane %v370_v62, 4  ;;  %v298_v8 = vsel %vm163_vm1, %v297_v0, %v279_v48  ;;  %v2326_v9 = vsel %vm163_vm1, %v379_v1, %v362_v61 }
 0x135   :  { %v304_v12 = vperm.slane %v298_v8, %v2251_v35  ;;  %v300_v14 = vsel %vm163_vm1, %v285_v54, %v299_v3  ;;  %v312_v19 = vsel %vm163_vm1, %v296_v63, %v311_v4  ;;  %v310_v23 = vsel %vm163_vm1, %v309_v13, %v290_v55 }
 0x136   :  { %v2331_v15 = vsel %vm163_vm1, %v375_v7, %v358_v6  ;;  %v308_v18 = vperm.slane %v300_v14, %v2251_v35  ;;  %v377_v22 = vrot.slane %v358_v6, 4  ;;  %v320_v24 = vperm.slane %v312_v19, %v2251_v35 }
 0x137   :  { %v323_v25 = vrot.slane %v304_v12, 4  ;;  %v2338_v27 = vsel %vm163_vm1, %v374_v58, %v381_v5  ;;  %v316_v28 = vperm.slane %v310_v23, %v2251_v35  ;;  %v465_v43 = vrot.slane %v386_v40, 4 }
 0x138   :  { %v327_v30 = vrot.slane %v308_v18, 4  ;;  %v2342_v31 = vsel %vm163_vm1, %v370_v62, %v377_v22  ;;  %v325_v32 = vrot.slane %v320_v24, 4  ;;  %v409_v1 = vrot.slane %v384_v41, 4 }
 0x139   :  { %v321_v29 = vrot.slane %v316_v28, 4  ;;  %v2345_v33 = vsel %vm163_vm1, %v316_v28, %v323_v25 }
 0x13a   :  { %v2348_v34 = vsel %vm163_vm1, %v320_v24, %v327_v30  ;;  %v2351_v37 = vsel %vm163_vm1, %v325_v32, %v308_v18 }
 0x13b   :  { %v2354_v38 = vsel %vm163_vm1, %v321_v29, %v304_v12 }
 0x178   :  { %v394_v39 = vpop.permute.xlu2 %393 }
 0x179   :  { %v463_v42 = vrot.slane %v394_v39, 4  ;;  %v466_v45 = vsel %vm163_vm1, %v394_v39, %v465_v43 }
 0x17a   :  { %v474_v47 = vperm.slane %v466_v45, %v2233_v21 }
 0x17b   :  { %v464_v44 = vsel %vm163_vm1, %v463_v42, %v386_v40 }
 0x17c   :  { %v470_v46 = vperm.slane %v464_v44, %v2233_v21  ;;  %v501_v55 = vrot.slane %v474_v47, 4 }
 0x17e   :  { %v489_v54 = vrot.slane %v470_v46, 4 }
 0x180   :  { %v388_v58 = vpop.permute.xlu2 %387 }
 0x181   :  { %v421_v2 = vrot.slane %v388_v58, 4 }
 0x188   :  { %v398_v48 = vpop.permute.xlu0 %397  ;;  %v390_v49 = vpop.permute.xlu1 %389 }
 0x189   :  { %v475_v50 = vrot.slane %v398_v48, 4  ;;  %v477_v51 = vrot.slane %v390_v49, 4 }
 0x18b   :  { %v476_v52 = vsel %vm163_vm1, %v475_v50, %v390_v49  ;;  %v478_v53 = vsel %vm163_vm1, %v398_v48, %v477_v51 }
 0x18c   :  { %v482_v56 = vperm.slane %v476_v52, %v2233_v21  ;;  %v486_v57 = vperm.slane %v478_v53, %v2233_v21 }
 0x18e   :  { %v487_v59 = vrot.slane %v482_v56, 4  ;;  %v490_v60 = vsel %vm163_vm1, %v482_v56, %v489_v54  ;;  %v499_v61 = vrot.slane %v486_v57, 4  ;;  %v502_v62 = vsel %vm163_vm1, %v486_v57, %v501_v55 }
 0x18f   :  { %v498_v63 = vperm.slane %v490_v60, %v2251_v35  ;;  %v510_v0 = vperm.slane %v502_v62, %v2251_v35 }
 0x190   :  { %v488_v3 = vsel %vm163_vm1, %v487_v59, %v470_v46  ;;  %v500_v4 = vsel %vm163_vm1, %v499_v61, %v474_v47  ;;  %v392_v5 = vpop.permute.xlu0 %391 }
 0x191   :  { %v494_v6 = vperm.slane %v488_v3, %v2251_v35  ;;  %v506_v7 = vperm.slane %v500_v4, %v2251_v35  ;;  %v513_v8 = vrot.slane %v498_v63, 4  ;;  %v517_v12 = vrot.slane %v510_v0, 4  ;;  %v396_v13 = vpop.permute.xlu1 %395 }
 0x192   :  { %v407_v14 = vrot.slane %v392_v5, 4  ;;  %v410_v18 = vsel %vm163_vm1, %v392_v5, %v409_v1  ;;  %v419_v19 = vrot.slane %v396_v13, 4  ;;  %v422_v22 = vsel %vm163_vm1, %v396_v13, %v421_v2 }
 0x193   :  { %v511_v23 = vrot.slane %v494_v6, 4  ;;  %v514_v24 = vsel %vm163_vm1, 0.0, %v513_v8  ;;  %v515_v25 = vrot.slane %v506_v7, 4  ;;  %v518_v28 = vsel %vm163_vm1, 0.0, %v517_v12 }
 0x194   :  { %v573_v30 = vsel %vm163_vm1, %v513_v8, %v494_v6  ;;  %v578_v32 = vrot.slane %v514_v24, 4  ;;  %v589_v29 = vrot.slane %v518_v28, 4  ;;  %v408_v39 = vsel %vm163_vm1, %v407_v14, %v384_v41 }
 0x195   :  { %v414_v40 = vperm.slane %v408_v39, %v2233_v21  ;;  %v418_v42 = vperm.slane %v410_v18, %v2233_v21  ;;  %v420_v43 = vsel %vm163_vm1, %v419_v19, %v388_v58  ;;  %v430_v44 = vperm.slane %v422_v22, %v2233_v21 }
 0x196   :  { %v426_v45 = vperm.slane %v420_v43, %v2233_v21  ;;  %v512_v46 = vsel %vm163_vm1, 0.0, %v511_v23  ;;  %v516_v47 = vsel %vm163_vm1, 0.0, %v515_v25  ;;  %v577_v41 = vperm.slane %v573_v30, %v2233_v21 }
 0x197   :  { %v433_v48 = vrot.slane %v414_v40, 4  ;;  %v445_v49 = vrot.slane %v418_v42, 4  ;;  %v443_v50 = vrot.slane %v430_v44, 4  ;;  %v579_v52 = vsel %vm163_vm1, %v578_v32, %v512_v46 }
 0x198   :  { %v431_v51 = vrot.slane %v426_v45, 4  ;;  %v584_v53 = vsel %vm163_vm1, %v517_v12, %v506_v7  ;;  %v590_v57 = vsel %vm163_vm1, %v589_v29, %v516_v47  ;;  %v583_v63 = vperm.slane %v579_v52, %v2233_v21 }
 0x199   :  { %v434_v54 = vsel %vm163_vm1, %v426_v45, %v433_v48  ;;  %v444_v55 = vsel %vm163_vm1, %v443_v50, %v418_v42  ;;  %v446_v56 = vsel %vm163_vm1, %v430_v44, %v445_v49  ;;  %v588_v0 = vperm.slane %v584_v53, %v2233_v21 }
 0x19a   :  { %v432_v58 = vsel %vm163_vm1, %v431_v51, %v414_v40  ;;  %v442_v59 = vperm.slane %v434_v54, %v2251_v35  ;;  %v450_v60 = vperm.slane %v444_v55, %v2251_v35  ;;  %v454_v61 = vperm.slane %v446_v56, %v2251_v35 }
 0x19b   :  { %v438_v62 = vperm.slane %v432_v58, %v2251_v35  ;;  %v594_v4 = vperm.slane %v590_v57, %v2233_v21  ;;  %v597_v5 = vrot.slane %v577_v41, 4  ;;  %v609_v6 = vrot.slane %v588_v0, 4 }
 0x19c   :  { %v457_v1 = vrot.slane %v442_v59, 4  ;;  %v459_v2 = vrot.slane %v450_v60, 4  ;;  %v461_v3 = vrot.slane %v454_v61, 4  ;;  %v595_v25 = vrot.slane %v583_v63, 4 }
 0x19d   :  { %v455_v7 = vrot.slane %v438_v62, 4  ;;  %v598_v23 = vsel %vm163_vm1, %v583_v63, %v597_v5  ;;  %v610_v24 = vsel %vm163_vm1, %v594_v4, %v609_v6  ;;  %v607_v28 = vrot.slane %v594_v4, 4 }
 0x19e   :  { %v458_v8 = vsel %vm163_vm1, 0.0, %v457_v1  ;;  %v462_v12 = vsel %vm163_vm1, 0.0, %v461_v3  ;;  %v530_v13 = vsel %vm163_vm1, %v461_v3, %v450_v60  ;;  %v460_v14 = vsel %vm163_vm1, 0.0, %v459_v2 }
 0x19f   :  { %v524_v18 = vrot.slane %v458_v8, 4  ;;  %v534_v19 = vperm.slane %v530_v13, %v2233_v21  ;;  %v535_v22 = vrot.slane %v462_v12, 4  ;;  %v618_v30 = vperm.slane %v610_v24, %v2251_v35  ;;  %v134_v24 = vld [vmem:[#allocation5 + $0x8] sm:$0xff] }
 0x1a0   :  { %v519_v32 = vsel %vm163_vm1, %v457_v1, %v438_v62  ;;  %v596_v39 = vsel %vm163_vm1, %v595_v25, %v577_v41  ;;  %v608_v40 = vsel %vm163_vm1, %v607_v28, %v588_v0  ;;  %v456_v42 = vsel %vm163_vm1, 0.0, %v455_v7 }
 0x1a1   :  { %v536_v29 = vsel %vm163_vm1, %v535_v22, %v460_v14  ;;  %v523_v43 = vperm.slane %v519_v32, %v2233_v21  ;;  %v606_v44 = vperm.slane %v598_v23, %v2251_v35  ;;  %v623_v45 = vrot.slane %v618_v30, 4 }
 0x1a2   :  { %v614_v46 = vperm.slane %v608_v40, %v2251_v35  ;;  %v525_v47 = vsel %vm163_vm1, %v524_v18, %v456_v42  ;;  %v540_v49 = vperm.slane %v536_v29, %v2233_v21  ;;  %v555_v51 = vrot.slane %v534_v19, 4 }
 0x1a3   :  { %v529_v48 = vperm.slane %v525_v47, %v2233_v21  ;;  %v543_v50 = vrot.slane %v523_v43, 4  ;;  %v624_v41 = vsel %vm163_vm1, %v623_v45, %v606_v44  ;;  %v602_v52 = vperm.slane %v596_v39, %v2251_v35 }
 0x1a4   :  { %v619_v53 = vrot.slane %v614_v46, 4  ;;  %1881 = vmatpush.xpose.msk.msra.mxu3 %vm875_vm2, %v624_v41  ;;  %v556_v55 = vsel %vm163_vm1, %v540_v49, %v555_v51  ;;  %v553_v57 = vrot.slane %v540_v49, 4  ;;  %v625_v61 = vrot.slane %v606_v44, 4 }
 0x1a5   :  { %v544_v54 = vsel %vm163_vm1, %v529_v48, %v543_v50  ;;  %v541_v56 = vrot.slane %v529_v48, 4  ;;  %v564_v60 = vperm.slane %v556_v55, %v2251_v35  ;;  %v621_v3 = vrot.slane %v602_v52, 4 }
 0x1a6   :  { %v620_v58 = vsel %vm163_vm1, %v619_v53, %v602_v52  ;;  %v552_v59 = vperm.slane %v544_v54, %v2251_v35  ;;  %v554_v63 = vsel %vm163_vm1, %v553_v57, %v534_v19  ;;  %v626_v7 = vsel %vm163_vm1, %v618_v30, %v625_v61  ;;  %v2478_v52 = vpop.permute.xlu0 %1917 }
 0x1a7   :  { %1873 = vmatpush.xpose.msk.msra.mxu2 %vm875_vm2, %v620_v58  ;;  %v542_v62 = vsel %vm163_vm1, %v541_v56, %v523_v43  ;;  %1882 = vmatmul.msk.f32.vlgmr.msra.gmra.mxu3 %vm875_vm2, %v2326_v9  ;;  %v569_v0 = vrot.slane %v564_v60, 4  ;;  %v560_v2 = vperm.slane %v554_v63, %v2251_v35  ;;  %v622_v13 = vsel %vm163_vm1, %v614_v46, %v621_v3 }
 0x1a8   :  { %v548_v1 = vperm.slane %v542_v62, %v2251_v35  ;;  %v571_v8 = vrot.slane %v552_v59, 4  ;;  %v2123_v14 = vmov 0.0   ;;  %vm872_vm4 = vcmp.eq.f32.partialorder %v134_v24, 0.0 }
 0x1a9   :  { %v570_v4 = vsel %vm163_vm1, %v569_v0, %v552_v59  ;;  %v565_v5 = vrot.slane %v560_v2, 4  ;;  %v1921_v41 = vpack.i.bf16 %v2243_v26, %v2217_v11  ;;  %v1919_v24 = vunpack.i.l.bf16 %v2478_v52 }
 0x1aa   :  { %1874 = vmatmul.msk.f32.vlgmr.msra.gmra.mxu2 %vm875_vm2, %v2331_v15  ;;  %v567_v6 = vrot.slane %v548_v1, 4  ;;  %v572_v15 = vsel %vm163_vm1, %v564_v60, %v571_v8 }
 0x1ab   :  { %1879 = vmatpush.xpose.msk.msrb.mxu2 %vm875_vm2, %v570_v4  ;;  %v566_v9 = vsel %vm163_vm1, %v565_v5, %v548_v1 }
 0x1ac   :  { %v568_v12 = vsel %vm163_vm1, %v560_v2, %v567_v6  ;;  %1871 = vmatpush.xpose.msk.msra.mxu1 %vm875_vm2, %v566_v9 }
 0x1ad   :  { %1875 = vmatpush.xpose.msk.msrb.mxu0 %vm875_vm2, %v568_v12 }
 0x1af   :  { %1885 = vmatpush.xpose.msk.msra.mxu2 %vm875_vm2, %v626_v7  ;;  %1872 = vmatmul.msk.f32.vlgmr.msra.gmra.mxu1 %vm875_vm2, %v2354_v38  ;;  %v133_v38 = vld [vmem:[#allocation5] sm:$0xff] }
 0x1b0   :  { %1877 = vmatpush.xpose.msk.msrb.mxu1 %vm875_vm2, %v622_v13  ;;  %1876 = vmatmul.msk.f32.vlgmr.msrb.gmra.mxu0 %vm875_vm2, %v2345_v33  ;;  %vm871_vm3 = vcmp.eq.f32.partialorder %v133_v38, 0.0 }
 0x1b1   :  { %v873_v18 = vsel %vm871_vm3, -1e+18, %v2123_v14 }
 0x1b2   :  { %1880 = vmatmul.msk.f32.vlgmr.msrb.gmra.mxu2 %vm875_vm2, %v2351_v37 }
 0x1b4   :  { %1883 = vmatpush.xpose.msk.msra.mxu1 %vm875_vm2, %v572_v15 }
 0x1b7   :  { %1878 = vmatmul.msk.f32.vlgmr.msrb.gmra.mxu1 %vm875_vm2, %v2342_v31 }
 0x1ba   :  { %1886 = vmatmul.msk.f32.vlgmr.msra.gmra.mxu2 %vm875_vm2, %v2338_v27  ;;  %v874_v27 = vsel %vm872_vm4, -1e+18, %v2123_v14 }
 0x1bf   :  { %1884 = vmatmul.msk.f32.vlgmr.msra.gmra.mxu1 %vm875_vm2, %v2348_v34 }
 0x22a   :  { %v1029_v40 = vpop.f32.mrf.mxu3 }
 0x22b   :  { %v1030_v42 = vadd.f32 %v1029_v40, %v874_v27 }
 0x22c   :  { %v899_v33 = vpop.f32.mrf.mxu1 }
 0x22d   :  { %v925_v19 = vpop.f32.mrf.mxu2  ;;  %v900_v22 = vadd.f32 %v899_v33, %v873_v18  ;;  %v951_v23 = vpop.f32.mrf.mxu0  ;;  %v1099_v49 = vsel %vm875_vm2, %v1030_v42, -inf  ;;  %v1920_v33 = vunpack.i.h.bf16 %v2478_v52 }
 0x22e   :  { %v952_v25 = vadd.f32 %v951_v23, %v873_v18  ;;  %v926_v50 = vadd.f32 %v925_v19, %v874_v27 }
 0x22f   :  { %v1084_v37 = vsel %vm875_vm2, %v900_v22, -inf }
 0x230   :  { %1085 = vmax.xlane.f32.xlu2 %v1084_v37  ;;  %v1090_v31 = vsel %vm875_vm2, %v952_v25, -inf  ;;  %v1087_v51 = vsel %vm875_vm2, %v926_v50, -inf  ;;  %v665_v37 = vrot.slane %v1920_v33, 4 }
 0x231   :  { %1091 = vmax.xlane.f32.xlu0 %v1090_v31 }
 0x234   :  { %v977_v34 = vpop.f32.mrf.mxu1 }
 0x235   :  { %v1003_v28 = vpop.f32.mrf.mxu2  ;;  %v2462_v32 = vadd.f32 %v977_v34, %v874_v27 }
 0x236   :  { %v1004_v30 = vadd.f32 %v1003_v28, %v873_v18 }
 0x237   :  { %v1093_v39 = vsel %vm875_vm2, %v2462_v32, -inf }
 0x238   :  { %v1096_v29 = vsel %vm875_vm2, %v1004_v30, -inf  ;;  %1094 = vmax.xlane.f32.xlu2 %v1093_v39 }
 0x239   :  { %1097 = vmax.xlane.f32.xlu1 %v1096_v29 }
 0x23c   :  { %v1055_v44 = vpop.f32.mrf.mxu1 }
 0x23d   :  { %v1081_v43 = vpop.f32.mrf.mxu2  ;;  %v1056_v46 = vadd.f32 %v1055_v44, %v873_v18  ;;  %v1926_v18 = vpack.i.bf16 %v2206_v10, %v2253_v36 }
 0x23e   :  { %v1082_v45 = vadd.f32 %v1081_v43, %v874_v27  ;;  %v653_v27 = vrot.slane %v1919_v24, 4 }
 0x23f   :  { %v1102_v48 = vsel %vm875_vm2, %v1056_v46, -inf }
 0x240   :  { %v1105_v47 = vsel %vm875_vm2, %v1082_v45, -inf  ;;  %1103 = vmax.xlane.f32.xlu0 %v1102_v48  ;;  %1100 = vmax.xlane.f32.xlu2 %v1099_v49 }
 0x241   :  { %1106 = vmax.xlane.f32.xlu1 %v1105_v47 }
 0x248   :  { %1088 = vmax.xlane.f32.xlu2 %v1087_v51 }
 0x254   :  { %1932 = vrot.lane.b32.xlu0 %v1931_v20, %s2122_s28 }
 0x25a   :  { %1922 = vrot.lane.b32.xlu1 %v1921_v41, %s2122_s28 }
 0x2a3   :  { %v1086_v53 = vpop.xlane.xlu2 %1085 }
 0x2a4   :  { %v1108_v54 = vsub.f32 %v900_v22, %v1086_v53  ;;  %v1092_v55 = vpop.xlane.xlu0 %1091 }
 0x2a5   :  { %v1110_v56 = vsub.f32 %v952_v25, %v1092_v55 }
 0x2a6   :  { %v1116_v57 = vmul.f32 1.442695, %v1108_v54 }
 0x2a7   :  { %v1120_v58 = vmul.f32 1.442695, %v1110_v56 }
 0x2a8   :  { %1940 = vpow2.f32 %v1116_v57 }
 0x2a9   :  { %1942 = vpow2.f32 %v1120_v58 }
 0x2ab   :  { %v2480_v60 = vpop.xlane.xlu2 %1094 }
 0x2ac   :  { %v1098_v59 = vpop.xlane.xlu1 %1097 }
 0x2ad   :  { %v1112_v16 = vsub.f32 %v1004_v30, %v1098_v59 }
 0x2ae   :  { %v2482_v17 = vpop.eup %1940 }
 0x2af   :  { %v1124_v20 = vmul.f32 1.442695, %v1112_v16  ;;  %v2484_v11 = vpop.eup %1942  ;;  %v1132_v26 = vsel %vm875_vm2, %v2482_v17, 0.0 }
 0x2b0   :  { %1133 = vadd.xlane.f32.xlu2 %v1132_v26  ;;  %v1138_v61 = vsel %vm875_vm2, %v2484_v11, 0.0 }
 0x2b1   :  { %1944 = vpow2.f32 %v1124_v20  ;;  %1139 = vadd.xlane.f32.xlu1 %v1138_v61 }
 0x2b3   :  { %v1104_v62 = vpop.xlane.xlu0 %1103  ;;  %v1101_v0 = vpop.xlane.xlu2 %1100 }
 0x2b4   :  { %v1114_v63 = vsub.f32 %v1056_v46, %v1104_v62  ;;  %v1113_v3 = vsub.f32 %v1030_v42, %v1101_v0  ;;  %v1107_v6 = vpop.xlane.xlu1 %1106 }
 0x2b5   :  { %v1115_v12 = vsub.f32 %v1082_v45, %v1107_v6 }
 0x2b6   :  { %v1128_v2 = vmul.f32 1.442695, %v1114_v63  ;;  %v1126_v5 = vmul.f32 1.442695, %v1113_v3 }
 0x2b7   :  { %v2490_v1 = vpop.eup %1944  ;;  %v1130_v38 = vmul.f32 1.442695, %v1115_v12 }
 0x2b8   :  { %v1144_v4 = vsel %vm875_vm2, %v2490_v1, 0.0  ;;  %1946 = vpow2.f32 %v1128_v2 }
 0x2b9   :  { %1145 = vadd.xlane.f32.xlu0 %v1144_v4  ;;  %1948 = vpow2.f32 %v1126_v5 }
 0x2bb   :  { %v1089_v7 = vpop.xlane.xlu2 %1088 }
 0x2bc   :  { %v1109_v8 = vsub.f32 %v926_v50, %v1089_v7 }
 0x2be   :  { %v2494_v9 = vpop.eup %1946  ;;  %v1118_v13 = vmul.f32 1.442695, %v1109_v8 }
 0x2bf   :  { %v1150_v15 = vsel %vm875_vm2, %v2494_v9, 0.0  ;;  %v2498_v14 = vpop.eup %1948 }
 0x2c0   :  { %1950 = vpow2.f32 %v1118_v13  ;;  %v1147_v22 = vsel %vm875_vm2, %v2498_v14, 0.0 }
 0x2c1   :  { %1151 = vadd.xlane.f32.xlu0 %v1150_v15  ;;  %1952 = vpow2.f32 %v1130_v38  ;;  %v1111_v38 = vsub.f32 %v2462_v32, %v2480_v60 }
 0x2c6   :  { %v2502_v19 = vpop.eup %1950 }
 0x2c7   :  { %v1135_v23 = vsel %vm875_vm2, %v2502_v19, 0.0  ;;  %v2511_v31 = vpop.eup %1952 }
 0x2c8   :  { %1927 = vrot.lane.b32.xlu2 %v1926_v18, %s2122_s28  ;;  %1136 = vadd.xlane.f32.xlu1 %v1135_v23  ;;  %v1153_v43 = vsel %vm875_vm2, %v2511_v31, 0.0 }
 0x2c9   :  { %1148 = vadd.xlane.f32.xlu0 %v1147_v22 }
 0x2cc   :  { %v1923_v25 = vpop.permute.xlu1 %1922 }
 0x2cd   :  { %v1925_v10 = vunpack.i.h.bf16 %v1923_v25  ;;  %v1924_v36 = vunpack.i.l.bf16 %v1923_v25 }
 0x2cf   :  { %v663_v28 = vrot.slane %v1925_v10, 4  ;;  %v666_v34 = vsel %vm163_vm1, %v1925_v10, %v665_v37  ;;  %v651_v29 = vrot.slane %v1924_v36, 4  ;;  %v654_v39 = vsel %vm163_vm1, %v1924_v36, %v653_v27 }
 0x2d0   :  { %v674_v30 = vperm.slane %v666_v34, %v2233_v21  ;;  %v662_v42 = vperm.slane %v654_v39, %v2233_v21  ;;  %1154 = vadd.xlane.f32.xlu1 %v1153_v43  ;;  %v1122_v27 = vmul.f32 1.442695, %v1111_v38 }
 0x2d1   :  { %v664_v40 = vsel %vm163_vm1, %v663_v28, %v1920_v33  ;;  %v652_v46 = vsel %vm163_vm1, %v651_v29, %v1919_v24 }
 0x2d2   :  { %v670_v44 = vperm.slane %v664_v40, %v2233_v21  ;;  %v687_v45 = vrot.slane %v674_v30, 4  ;;  %v658_v47 = vperm.slane %v652_v46, %v2233_v21  ;;  %v689_v48 = vrot.slane %v662_v42, 4  ;;  %v1933_v46 = vpop.permute.xlu0 %1932 }
 0x2d3   :  { %1954 = vpow2.f32 %v1122_v27 }
 0x2d4   :  { %v675_v49 = vrot.slane %v670_v44, 4  ;;  %v688_v50 = vsel %vm163_vm1, %v687_v45, %v662_v42  ;;  %v677_v51 = vrot.slane %v658_v47, 4  ;;  %v690_v41 = vsel %vm163_vm1, %v674_v30, %v689_v48 }
 0x2d5   :  { %v694_v52 = vperm.slane %v688_v50, %v2251_v35  ;;  %v698_v54 = vperm.slane %v690_v41, %v2251_v35  ;;  %v1935_v48 = vunpack.i.h.bf16 %v1933_v46 }
 0x2d6   :  { %v676_v53 = vsel %vm163_vm1, %v675_v49, %v658_v47  ;;  %v678_v55 = vsel %vm163_vm1, %v670_v44, %v677_v51  ;;  %v1934_v47 = vunpack.i.l.bf16 %v1933_v46 }
 0x2d7   :  { %v682_v56 = vperm.slane %v676_v53, %v2251_v35  ;;  %v686_v57 = vperm.slane %v678_v55, %v2251_v35  ;;  %v703_v58 = vrot.slane %v694_v52, 4  ;;  %v705_v59 = vrot.slane %v698_v54, 4 }
 0x2d8   :  { %v719_v49 = vrot.slane %v1934_v47, 4  ;;  %v721_v50 = vrot.slane %v1935_v48, 4 }
 0x2d9   :  { %v699_v16 = vrot.slane %v682_v56, 4  ;;  %v701_v20 = vrot.slane %v686_v57, 4  ;;  %v706_v26 = vsel %vm163_vm1, 0.0, %v705_v59  ;;  %v774_v61 = vsel %vm163_vm1, %v705_v59, %v694_v52  ;;  %v2557_v44 = vpop.eup %1954 }
 0x2da   :  { %v779_v62 = vrot.slane %v706_v26, 4  ;;  %v778_v63 = vperm.slane %v774_v61, %v2233_v21  ;;  %v704_v2 = vsel %vm163_vm1, 0.0, %v703_v58  ;;  %v1141_v45 = vsel %vm875_vm2, %v2557_v44, 0.0 }
 0x2db   :  { %v702_v0 = vsel %vm163_vm1, 0.0, %v701_v20  ;;  %v763_v3 = vsel %vm163_vm1, %v701_v20, %v682_v56  ;;  %v700_v8 = vsel %vm163_vm1, 0.0, %v699_v16  ;;  %v720_v52 = vsel %vm163_vm1, %v719_v49, %v1935_v48 }
 0x2dc   :  { %v768_v4 = vrot.slane %v702_v0, 4  ;;  %v767_v5 = vperm.slane %v763_v3, %v2233_v21  ;;  %v780_v6 = vsel %vm163_vm1, %v779_v62, %v704_v2  ;;  %v799_v7 = vrot.slane %v778_v63, 4 }
 0x2dd   :  { %v784_v12 = vperm.slane %v780_v6, %v2233_v21  ;;  %v722_v53 = vsel %vm163_vm1, %v1934_v47, %v721_v50  ;;  %v726_v54 = vperm.slane %v720_v52, %v2233_v21 }
 0x2de   :  { %v769_v13 = vsel %vm163_vm1, %v768_v4, %v700_v8  ;;  %v787_v15 = vrot.slane %v767_v5, 4  ;;  %v730_v56 = vperm.slane %v722_v53, %v2233_v21 }
 0x2df   :  { %v773_v18 = vperm.slane %v769_v13, %v2233_v21  ;;  %v797_v33 = vrot.slane %v784_v12, 4  ;;  %v800_v22 = vsel %vm163_vm1, %v784_v12, %v799_v7  ;;  %v731_v20 = vrot.slane %v726_v54, 4 }
 0x2e0   :  { %v808_v23 = vperm.slane %v800_v22, %v2251_v35  ;;  %v743_v2 = vrot.slane %v730_v56, 4 }
 0x2e1   :  { %v785_v24 = vrot.slane %v773_v18, 4  ;;  %v798_v25 = vsel %vm163_vm1, %v797_v33, %v778_v63  ;;  %v788_v37 = vsel %vm163_vm1, %v773_v18, %v787_v15 }
 0x2e2   :  { %v804_v10 = vperm.slane %v798_v25, %v2251_v35  ;;  %v796_v36 = vperm.slane %v788_v37, %v2251_v35  ;;  %v813_v32 = vrot.slane %v808_v23, 4 }
 0x2e3   :  { %v786_v28 = vsel %vm163_vm1, %v785_v24, %v767_v5 }
 0x2e4   :  { %v792_v60 = vperm.slane %v786_v28, %v2251_v35  ;;  %v809_v34 = vrot.slane %v804_v10, 4  ;;  %v815_v30 = vrot.slane %v796_v36, 4  ;;  %v814_v40 = vsel %vm163_vm1, %v813_v32, %v796_v36 }
 0x2e6   :  { %v810_v29 = vsel %vm163_vm1, %v809_v34, %v792_v60  ;;  %v811_v39 = vrot.slane %v792_v60, 4  ;;  %v816_v43 = vsel %vm163_vm1, %v808_v23, %v815_v30 }
 0x2e7   :  { %1294 = vmatpush.msrb.mxu3 %v810_v29 }
 0x2e8   :  { %v812_v42 = vsel %vm163_vm1, %v804_v10, %v811_v39 }
 0x2e9   :  { %1386 = vmatpush.msra.mxu3 %v814_v40  ;;  %1340 = vmatpush.msrb.mxu1 %v812_v42 }
 0x2eb   :  { %1432 = vmatpush.msra.mxu1 %v816_v43 }
 0x2f1   :  { %1142 = vadd.xlane.f32.xlu2 %v1141_v45 }
 0x323   :  { %v1134_v51 = vpop.xlane.xlu2 %1133 }
 0x324   :  { %1956 = vrcp.f32 %v1134_v51  ;;  %v1140_v41 = vpop.xlane.xlu1 %1139  ;;  %v1165_v62 = vand.u32 2147483647, %v1134_v51  ;;  %v1167_v63 = vand.u32 2147483648, %v1134_v51  ;;  %vm1161_vm5 = vweird.f32 %v1134_v51 }
 0x325   :  { %1958 = vrcp.f32 %v1140_v41  ;;  %v1195_v6 = vand.u32 2147483647, %v1140_v41  ;;  %vm1191_vm7 = vweird.f32 %v1140_v41  ;;  %v1197_v12 = vand.u32 2147483648, %v1140_v41 }
 0x326   :  { %vm2568_vm8 = vcmp.eq.f32.partialorder %v1165_v62, 8.507059e+37  ;;  %v1168_v18 = vor.u32 1.1754944e-38, %v1167_v63 }
 0x327   :  { %vm2580_vm11 = vcmp.eq.f32.partialorder %v1195_v6, 8.507059e+37  ;;  %v1198_v32 = vor.u32 1.1754944e-38, %v1197_v12 }
 0x32a   :  { %v1957_v55 = vpop.eup %1956 }
 0x32b   :  { %v1959_v57 = vpop.eup %1958  ;;  %v1157_v58 = vmul.f32 %v1957_v55, %v1134_v51  ;;  %v1928_v16 = vpop.permute.xlu2 %1927  ;;  %vm1162_vm6 = vweird.f32 %v1957_v55 }
 0x32c   :  { %v2565_v59 = vpop.xlane.xlu0 %1145  ;;  %v1187_v26 = vmul.f32 %v1959_v57, %v1140_v41  ;;  %v1930_v0 = vunpack.i.h.bf16 %v1928_v16  ;;  %v1929_v4 = vunpack.i.l.bf16 %v1928_v16  ;;  %vm2574_vm9 = vmor %vm1161_vm5, %vm1162_vm6  ;;  %vm1192_vm10 = vweird.f32 %v1959_v57 }
 0x32d   :  { %1960 = vrcp.f32 %v2565_v59  ;;  %v1158_v61 = vsub.f32 1.0, %v1157_v58  ;;  %vm1221_vm12 = vweird.f32 %v2565_v59  ;;  %v1227_v60 = vand.u32 2147483648, %v2565_v59  ;;  %vm2593_vm13 = vmor %vm1191_vm7, %vm1192_vm10 }
 0x32e   :  { %v1188_v3 = vsub.f32 1.0, %v1187_v26  ;;  %v709_v7 = vrot.slane %v1930_v0, 4  ;;  %v707_v13 = vrot.slane %v1929_v4, 4  ;;  %v1225_v51 = vand.u32 2147483647, %v2565_v59 }
 0x32f   :  { %v1159_v5 = vmul.f32 %v1957_v55, %v1158_v61  ;;  %v1228_v26 = vor.u32 1.1754944e-38, %v1227_v60 }
 0x330   :  { %v1189_v8 = vmul.f32 %v1959_v57, %v1188_v3  ;;  %v710_v33 = vsel %vm163_vm1, %v1929_v4, %v709_v7  ;;  %v708_v25 = vsel %vm163_vm1, %v707_v13, %v1930_v0  ;;  %vm1226_vm3 = vcmp.eq.f32.partialorder %v1225_v51, 8.507059e+37 }
 0x331   :  { %v1160_v15 = vadd.f32 %v1957_v55, %v1159_v5  ;;  %v718_v37 = vperm.slane %v710_v33, %v2233_v21  ;;  %v714_v27 = vperm.slane %v708_v25, %v2233_v21 }
 0x332   :  { %v1190_v24 = vadd.f32 %v1959_v57, %v1189_v8 }
 0x333   :  { %v1961_v22 = vpop.eup %1960  ;;  %v1164_v28 = vsel %vm2574_vm9, %v1957_v55, %v1160_v15  ;;  %v745_v34 = vrot.slane %v718_v37, 4  ;;  %v732_v40 = vsel %vm163_vm1, %v731_v20, %v714_v27  ;;  %v733_v42 = vrot.slane %v714_v27, 4 }
 0x334   :  { %v1217_v36 = vmul.f32 %v1961_v22, %v2565_v59  ;;  %v2590_v30 = vpop.xlane.xlu0 %1151  ;;  %v744_v43 = vsel %vm163_vm1, %v743_v2, %v718_v37  ;;  %v1194_v45 = vsel %vm2593_vm13, %v1959_v57, %v1190_v24  ;;  %v1169_v47 = vsel %vm2568_vm8, %v1168_v18, %v1164_v28 }
 0x335   :  { %v746_v46 = vsel %vm163_vm1, %v730_v56, %v745_v34  ;;  %1962 = vrcp.f32 %v2590_v30  ;;  %vm1222_vm14 = vweird.f32 %v1961_v22  ;;  %v734_v49 = vsel %vm163_vm1, %v726_v54, %v733_v42 }
 0x336   :  { %v1218_v39 = vsub.f32 1.0, %v1217_v36  ;;  %v754_v50 = vperm.slane %v746_v46, %v2251_v35  ;;  %v738_v41 = vperm.slane %v732_v40, %v2251_v35  ;;  %v742_v52 = vperm.slane %v734_v49, %v2251_v35  ;;  %vm2616_vm15 = vmor %vm1221_vm12, %vm1222_vm14 }
 0x337   :  { %v750_v53 = vperm.slane %v744_v43, %v2251_v35  ;;  %v1199_v55 = vsel %vm2580_vm11, %v1198_v32, %v1194_v45  ;;  %v1170_v58 = vmul.f32 %v2482_v17, %v1169_v47  ;;  %v1257_v5 = vand.u32 2147483648, %v2590_v30 }
 0x338   :  { %v1219_v48 = vmul.f32 %v1961_v22, %v1218_v39  ;;  %v761_v57 = vrot.slane %v754_v50, 4  ;;  %v757_v16 = vrot.slane %v742_v52, 4  ;;  %v755_v63 = vrot.slane %v738_v41, 4 }
 0x339   :  { %1887 = vmatmul.msk.f32.vlgmr.msrb.gmra.mxu3 %vm875_vm2, %v1170_v58  ;;  %v759_v17 = vrot.slane %v750_v53, 4  ;;  %v1200_v59 = vmul.f32 %v2484_v11, %v1199_v55  ;;  %vm1251_vm4 = vweird.f32 %v2590_v30  ;;  %v1255_v15 = vand.u32 2147483647, %v2590_v30 }
 0x33a   :  { %v1220_v56 = vadd.f32 %v1961_v22, %v1219_v48  ;;  %v762_v61 = vsel %vm163_vm1, 0.0, %v761_v57  ;;  %v758_v0 = vsel %vm163_vm1, 0.0, %v757_v16  ;;  %v756_v11 = vsel %vm163_vm1, 0.0, %v755_v63 }
 0x33b   :  { %v1963_v62 = vpop.eup %1962  ;;  %v2628_v3 = vpop.xlane.xlu1 %1136  ;;  %v822_v7 = vrot.slane %v758_v0, 4  ;;  %v833_v8 = vrot.slane %v762_v61, 4  ;;  %1889 = vmatmul.msk.f32.vlgmr.msrb.gmra.mxu1 %vm875_vm2, %v1200_v59  ;;  %v760_v13 = vsel %vm163_vm1, 0.0, %v759_v17  ;;  %v817_v38 = vsel %vm163_vm1, %v757_v16, %v738_v41 }
 0x33c   :  { %v1224_v20 = vsel %vm2616_vm15, %v1961_v22, %v1220_v56  ;;  %v2626_v2 = vpop.xlane.xlu0 %1148  ;;  %v1247_v4 = vmul.f32 %v1963_v62, %v2590_v30  ;;  %vm1252_vm5 = vweird.f32 %v1963_v62  ;;  %v821_v22 = vperm.slane %v817_v38, %v2233_v21 }
 0x33d   :  { %1964 = vrcp.f32 %v2626_v2  ;;  %v1229_v6 = vsel %vm1226_vm3, %v1228_v26, %v1224_v20  ;;  %v1258_v23 = vor.u32 1.1754944e-38, %v1257_v5  ;;  %v823_v24 = vsel %vm163_vm1, %v822_v7, %v756_v11  ;;  %vm1253_vm6 = vmor %vm1251_vm4, %vm1252_vm5 }
 0x33e   :  { %1966 = vrcp.f32 %v2628_v3  ;;  %v1248_v12 = vsub.f32 1.0, %v1247_v4  ;;  %v1230_v33 = vmul.f32 %v2490_v1, %v1229_v6  ;;  %v834_v25 = vsel %vm163_vm1, %v833_v8, %v760_v13 }
 0x33f   :  { %v1713_v37 = vsel %vm875_vm2, %v1200_v59, 0.0  ;;  %v1712_v27 = vsel %vm875_vm2, %v1170_v58, 0.0  ;;  %v827_v28 = vperm.slane %v823_v24, %v2233_v21  ;;  %v828_v1 = vsel %vm163_vm1, %v761_v57, %v750_v53 }
 0x340   :  { %v1249_v18 = vmul.f32 %v1963_v62, %v1248_v12  ;;  %v838_v34 = vperm.slane %v834_v25, %v2233_v21  ;;  %v841_v29 = vrot.slane %v821_v22, 4  ;;  %v1714_v39 = vadd.f32 %v1713_v37, %v1712_v27 }
 0x341   :  { %1891 = vmatmul.msk.f32.vlgmr.msra.gmra.mxu3 %vm875_vm2, %v1230_v33  ;;  %vm1256_vm7 = vcmp.eq.f32.partialorder %v1255_v15, 8.507059e+37  ;;  %v1180_v46 = vand.u32 2147483647, %v2628_v3  ;;  %v832_v47 = vperm.slane %v828_v1, %v2233_v21  ;;  %v1182_v30 = vand.u32 2147483648, %v2628_v3 }
 0x342   :  { %v1250_v36 = vadd.f32 %v1963_v62, %v1249_v18  ;;  %v839_v50 = vrot.slane %v827_v28, 4  ;;  %vm1236_vm8 = vweird.f32 %v2626_v2  ;;  %v851_v51 = vrot.slane %v838_v34, 4 }
 0x343   :  { %v2645_v10 = vpop.eup %1964  ;;  %v842_v41 = vsel %vm163_vm1, %v827_v28, %v841_v29  ;;  %vm1176_vm10 = vweird.f32 %v2628_v3  ;;  %v853_v58 = vrot.slane %v832_v47, 4  ;;  %vm1181_vm11 = vcmp.eq.f32.partialorder %v1180_v46, 8.507059e+37 }
 0x344   :  { %v1967_v32 = vpop.eup %1966  ;;  %v1232_v60 = vmul.f32 %v2645_v10, %v2626_v2  ;;  %v1254_v40 = vsel %vm1253_vm6, %v1963_v62, %v1250_v36  ;;  %v840_v55 = vsel %vm163_vm1, %v839_v50, %v821_v22  ;;  %v850_v56 = vperm.slane %v842_v41, %v2251_v35 }
 0x345   :  { %v1172_v42 = vmul.f32 %v1967_v32, %v2628_v3  ;;  %v1259_v43 = vsel %vm1256_vm7, %v1258_v23, %v1254_v40  ;;  %vm1177_vm9 = vweird.f32 %v1967_v32  ;;  %v852_v57 = vsel %vm163_vm1, %v851_v51, %v832_v47  ;;  %v1155_v23 = vpop.xlane.xlu1 %1154 }
 0x346   :  { %v1233_v45 = vsub.f32 1.0, %v1232_v60  ;;  %v1260_v49 = vmul.f32 %v2494_v9, %v1259_v43  ;;  %v846_v9 = vperm.slane %v840_v55, %v2251_v35  ;;  %v1183_v16 = vor.u32 1.1754944e-38, %v1182_v30  ;;  %vm1178_vm13 = vmor %vm1176_vm10, %vm1177_vm9 }
 0x347   :  { %v1173_v48 = vsub.f32 1.0, %v1172_v42  ;;  %v858_v20 = vperm.slane %v852_v57, %v2251_v35  ;;  %vm1237_vm12 = vweird.f32 %v2645_v10  ;;  %v869_v61 = vrot.slane %v850_v56, 4 }
 0x348   :  { %v1234_v52 = vmul.f32 %v2645_v10, %v1233_v45  ;;  %1893 = vmatmul.msk.f32.vlgmr.msra.gmra.mxu1 %vm875_vm2, %v1260_v49  ;;  %v865_v26 = vrot.slane %v846_v9, 4  ;;  %v1715_v62 = vsel %vm875_vm2, %v1230_v33, 0.0  ;;  %v854_v59 = vsel %vm163_vm1, %v838_v34, %v853_v58  ;;  %vm1238_vm14 = vmor %vm1236_vm8, %vm1237_vm12 }
 0x349   :  { %v1174_v53 = vmul.f32 %v1967_v32, %v1173_v48  ;;  %v863_v17 = vrot.slane %v858_v20, 4  ;;  %v1242_v3 = vand.u32 2147483648, %v2626_v2  ;;  %v862_v6 = vperm.slane %v854_v59, %v2251_v35 }
 0x34a   :  { %v1235_v63 = vadd.f32 %v2645_v10, %v1234_v52  ;;  %v866_v5 = vsel %vm163_vm1, %v858_v20, %v865_v26  ;;  %v1240_v7 = vand.u32 2147483647, %v2626_v2  ;;  %v1716_v11 = vadd.f32 %v1715_v62, %v1714_v39 }
 0x34b   :  { %v1175_v54 = vadd.f32 %v1967_v32, %v1174_v53  ;;  %v864_v8 = vsel %vm163_vm1, %v863_v17, %v846_v9  ;;  %1363 = vmatpush.msrb.mxu2 %v866_v5  ;;  %v867_v13 = vrot.slane %v862_v6, 4  ;;  %v870_v15 = vsel %vm163_vm1, %v862_v6, %v869_v61 }
 0x34c   :  { %1317 = vmatpush.msra.mxu0 %v864_v8  ;;  %v1717_v38 = vsel %vm875_vm2, %v1260_v49, 0.0  ;;  %v1239_v18 = vsel %vm1238_vm14, %v2645_v10, %v1235_v63  ;;  %vm1241_vm15 = vcmp.eq.f32.partialorder %v1240_v7, 8.507059e+37  ;;  %1968 = vrcp.f32 %v1155_v23 }
 0x34d   :  { %v1179_v0 = vsel %vm1178_vm13, %v1967_v32, %v1175_v54  ;;  %1455 = vmatpush.msra.mxu2 %v870_v15  ;;  %v2690_v33 = vadd.f32 %v1717_v38, %v1716_v11  ;;  %v868_v22 = vsel %vm163_vm1, %v867_v13, %v850_v56  ;;  %v2124_v36 = vmov 4.0  }
 0x34e   :  { %v1184_v4 = vsel %vm1181_vm11, %v1183_v16, %v1179_v0  ;;  %1409 = vmatpush.msrb.mxu0 %v868_v22  ;;  %1970 = vrcp.f32 %v2124_v36  ;;  %vm1266_vm4 = vweird.f32 %v1155_v23  ;;  %v1270_v42 = vand.u32 2147483647, %v1155_v23 }
 0x34f   :  { %v1185_v12 = vmul.f32 %v2502_v19, %v1184_v4  ;;  %v1243_v19 = vor.u32 1.1754944e-38, %v1242_v3  ;;  %vm1706_vm12 = vcmask 130048   ;;  %vm1709_vm13 = vcmask 195584  }
 0x350   :  { %vm1271_vm9 = vcmp.eq.f32.partialorder %v1270_v42, 8.507059e+37 }
 0x351   :  { %1888 = vmatmul.msk.f32.vlgmr.msra.gmra.mxu0 %vm875_vm2, %v1185_v12  ;;  %v1244_v2 = vsel %vm1241_vm15, %v1243_v19, %v1239_v18  ;;  %v1719_v56 = vsel %vm875_vm2, %v1185_v12, 0.0 }
 0x352   :  { %v1245_v24 = vmul.f32 %v2498_v14, %v1244_v2  ;;  %v1969_v25 = vpop.eup %1968  ;;  %v1272_v14 = vand.u32 2147483648, %v1155_v23 }
 0x353   :  { %v1262_v37 = vmul.f32 %v1969_v25, %v1155_v23  ;;  %vm1267_vm3 = vweird.f32 %v1969_v25 }
 0x354   :  { %v1971_v28 = vpop.eup %1970  ;;  %vm1268_vm6 = vmor %vm1266_vm4, %vm1267_vm3  ;;  %v1273_v30 = vor.u32 1.1754944e-38, %v1272_v14  ;;  %v1722_v54 = vsel %vm875_vm2, %v1245_v24, 0.0  ;;  %vm1840_vm3 = vcmask 523264   ;;  %vm1843_vm4 = vcmask 588800  }
 0x355   :  { %v1263_v27 = vsub.f32 1.0, %v1262_v37  ;;  %v1727_v39 = vmul.f32 4.0, %v1971_v28  ;;  %vm1731_vm11 = vweird.f32 %v1971_v28 }
 0x357   :  { %v1264_v1 = vmul.f32 %v1969_v25, %v1263_v27  ;;  %v1728_v48 = vsub.f32 1.0, %v1727_v39 }
 0x359   :  { %1892 = vmatmul.msk.f32.vlgmr.msrb.gmra.mxu0 %vm875_vm2, %v1245_v24  ;;  %v1265_v34 = vadd.f32 %v1969_v25, %v1264_v1  ;;  %v1729_v53 = vmul.f32 %v1971_v28, %v1728_v48 }
 0x35b   :  { %v1269_v46 = vsel %vm1268_vm6, %v1969_v25, %v1265_v34  ;;  %v1730_v58 = vadd.f32 %v1971_v28, %v1729_v53 }
 0x35c   :  { %v1274_v51 = vsel %vm1271_vm9, %v1273_v30, %v1269_v46 }
 0x35d   :  { %v1275_v55 = vmul.f32 %v2511_v31, %v1274_v51  ;;  %v2702_v61 = vsel %vm1731_vm11, %v1971_v28, %v1730_v58 }
 0x35f   :  { %v1724_v20 = vsel %vm875_vm2, %v1275_v55, 0.0 }
 0x364   :  { %v1143_v10 = vpop.xlane.xlu2 %1142 }
 0x365   :  { %1972 = vrcp.f32 %v1143_v10  ;;  %v1212_v40 = vand.u32 2147483648, %v1143_v10  ;;  %v1210_v45 = vand.u32 2147483647, %v1143_v10  ;;  %vm1206_vm7 = vweird.f32 %v1143_v10 }
 0x367   :  { %v1213_v49 = vor.u32 1.1754944e-38, %v1212_v40  ;;  %vm1211_vm10 = vcmp.eq.f32.partialorder %v1210_v45, 8.507059e+37 }
 0x36b   :  { %v1973_v32 = vpop.eup %1972 }
 0x36c   :  { %v1202_v60 = vmul.f32 %v1973_v32, %v1143_v10  ;;  %vm1207_vm5 = vweird.f32 %v1973_v32 }
 0x36d   :  { %vm1208_vm8 = vmor %vm1206_vm7, %vm1207_vm5 }
 0x36e   :  { %v1203_v29 = vsub.f32 1.0, %v1202_v60 }
 0x370   :  { %v1204_v43 = vmul.f32 %v1973_v32, %v1203_v29 }
 0x372   :  { %v1205_v47 = vadd.f32 %v1973_v32, %v1204_v43 }
 0x374   :  { %v1209_v50 = vsel %vm1208_vm8, %v1973_v32, %v1205_v47 }
 0x375   :  { %v1214_v41 = vsel %vm1211_vm10, %v1213_v49, %v1209_v50 }
 0x376   :  { %v1215_v52 = vmul.f32 %v2557_v44, %v1214_v41 }
 0x378   :  { %1890 = vmatmul.msk.f32.vlgmr.msrb.gmra.mxu2 %vm875_vm2, %v1215_v52  ;;  %v1720_v9 = vsel %vm875_vm2, %v1215_v52, 0.0 }
 0x379   :  { %v1721_v57 = vadd.f32 %v1720_v9, %v1719_v56 }
 0x37b   :  { %v1723_v16 = vadd.f32 %v1722_v54, %v1721_v57 }
 0x37d   :  { %v1725_v26 = vadd.f32 %v1724_v20, %v1723_v16 }
 0x37f   :  { %v2705_v44 = vmul.f32 %v2702_v61, %v1725_v26 }
 0x380   :  { %1894 = vmatmul.msk.f32.vlgmr.msra.gmra.mxu2 %vm875_vm2, %v1275_v55 }
 0x3b8   :  { %v1342_v31 = vpop.f32.mrf.mxu1 }
 0x3b9   :  { %v1474_v63 = vrot.slane %v1342_v31, 4 }
 0x3bc   :  { %v1296_v62 = vpop.f32.mrf.mxu3 }
 0x3bd   :  { %v1462_v0 = vrot.slane %v1296_v62, 4 }
 0x3c4   :  { %v1388_v17 = vpop.f32.mrf.mxu3 }
 0x3c5   :  { %v1434_v59 = vpop.f32.mrf.mxu1  ;;  %v1460_v3 = vrot.slane %v1388_v17, 4  ;;  %v1463_v4 = vsel %vm163_vm1, %v1388_v17, %v1462_v0 }
 0x3c6   :  { %v1472_v5 = vrot.slane %v1434_v59, 4  ;;  %v1475_v6 = vsel %vm163_vm1, %v1434_v59, %v1474_v63  ;;  %v1471_v7 = vperm.slane %v1463_v4, %v2233_v21 }
 0x3c7   :  { %v1483_v8 = vperm.slane %v1475_v6, %v2233_v21  ;;  %v1461_v12 = vsel %vm163_vm1, %v1460_v3, %v1296_v62 }
 0x3c8   :  { %v1473_v11 = vsel %vm163_vm1, %v1472_v5, %v1342_v31  ;;  %v1467_v13 = vperm.slane %v1461_v12, %v2233_v21  ;;  %v1498_v15 = vrot.slane %v1471_v7, 4 }
 0x3c9   :  { %v1479_v38 = vperm.slane %v1473_v11, %v2233_v21  ;;  %v1496_v18 = vrot.slane %v1483_v8, 4 }
 0x3ca   :  { %v1486_v19 = vrot.slane %v1467_v13, 4  ;;  %v1499_v23 = vsel %vm163_vm1, %v1483_v8, %v1498_v15 }
 0x3cb   :  { %v1484_v22 = vrot.slane %v1479_v38, 4  ;;  %v1497_v2 = vsel %vm163_vm1, %v1496_v18, %v1471_v7  ;;  %v1507_v25 = vperm.slane %v1499_v23, %v2251_v35 }
 0x3cc   :  { %v1503_v24 = vperm.slane %v1497_v2, %v2251_v35  ;;  %v1487_v10 = vsel %vm163_vm1, %v1479_v38, %v1486_v19 }
 0x3cd   :  { %v1485_v37 = vsel %vm163_vm1, %v1484_v22, %v1467_v13  ;;  %v1495_v27 = vperm.slane %v1487_v10, %v2251_v35  ;;  %v1514_v1 = vrot.slane %v1507_v25, 4 }
 0x3ce   :  { %v1491_v36 = vperm.slane %v1485_v37, %v2251_v35  ;;  %v1512_v28 = vrot.slane %v1503_v24, 4  ;;  %v1319_v4 = vpop.f32.mrf.mxu0 }
 0x3cf   :  { %v1510_v60 = vrot.slane %v1495_v27, 4  ;;  %v1515_v29 = vsel %vm163_vm1, 0.0, %v1514_v1  ;;  %v1583_v39 = vsel %vm163_vm1, %v1514_v1, %v1503_v24  ;;  %v1518_v7 = vrot.slane %v1319_v4, 4 }
 0x3d0   :  { %v1508_v32 = vrot.slane %v1491_v36, 4  ;;  %v1513_v34 = vsel %vm163_vm1, 0.0, %v1512_v28  ;;  %v1588_v14 = vrot.slane %v1515_v29, 4  ;;  %v1587_v42 = vperm.slane %v1583_v39, %v2233_v21 }
 0x3d1   :  { %v1511_v40 = vsel %vm163_vm1, 0.0, %v1510_v60  ;;  %v1572_v45 = vsel %vm163_vm1, %v1510_v60, %v1491_v36 }
 0x3d2   :  { %v1509_v43 = vsel %vm163_vm1, 0.0, %v1508_v32  ;;  %v1577_v46 = vrot.slane %v1511_v40, 4  ;;  %v1576_v47 = vperm.slane %v1572_v45, %v2233_v21  ;;  %v1589_v48 = vsel %vm163_vm1, %v1588_v14, %v1513_v34 }
 0x3d3   :  { %v1593_v30 = vperm.slane %v1589_v48, %v2233_v21  ;;  %v1608_v49 = vrot.slane %v1587_v42, 4 }
 0x3d4   :  { %v1578_v50 = vsel %vm163_vm1, %v1577_v46, %v1509_v43  ;;  %v1596_v51 = vrot.slane %v1576_v47, 4 }
 0x3d5   :  { %v1582_v41 = vperm.slane %v1578_v50, %v2233_v21  ;;  %v1609_v52 = vsel %vm163_vm1, %v1593_v30, %v1608_v49  ;;  %v1606_v55 = vrot.slane %v1593_v30, 4 }
 0x3d6   :  { %v1617_v53 = vperm.slane %v1609_v52, %v2251_v35  ;;  %v1411_v5 = vpop.f32.mrf.mxu0 }
 0x3d7   :  { %v1597_v56 = vsel %vm163_vm1, %v1582_v41, %v1596_v51  ;;  %v1594_v9 = vrot.slane %v1582_v41, 4  ;;  %v1607_v16 = vsel %vm163_vm1, %v1606_v55, %v1587_v42  ;;  %v1516_v8 = vrot.slane %v1411_v5, 4 }
 0x3d8   :  { %v1605_v57 = vperm.slane %v1597_v56, %v2251_v35  ;;  %v1622_v58 = vrot.slane %v1617_v53, 4  ;;  %v1613_v62 = vperm.slane %v1607_v16, %v2251_v35  ;;  %v1519_v12 = vsel %vm163_vm1, %v1411_v5, %v1518_v7 }
 0x3d9   :  { %v1595_v54 = vsel %vm163_vm1, %v1594_v9, %v1576_v47  ;;  %v1517_v11 = vsel %vm163_vm1, %v1516_v8, %v1319_v4  ;;  %v1527_v13 = vperm.slane %v1519_v12, %v2233_v21 }
 0x3da   :  { %v1623_v20 = vsel %vm163_vm1, %v1622_v58, %v1605_v57  ;;  %v1624_v26 = vrot.slane %v1605_v57, 4  ;;  %v1601_v31 = vperm.slane %v1595_v54, %v2251_v35  ;;  %v1618_v17 = vrot.slane %v1613_v62, 4 }
 0x3db   :  { %1690 = vrot.lane.b32.xlu1 %v1623_v20, %s2125_s29  ;;  %v1523_v38 = vperm.slane %v1517_v11, %v2233_v21  ;;  %v1554_v2 = vrot.slane %v1527_v13, 4 }
 0x3dc   :  { %v1625_v63 = vsel %vm163_vm1, %v1617_v53, %v1624_v26  ;;  %v1620_v0 = vrot.slane %v1601_v31, 4  ;;  %v2751_v3 = vsel %vm163_vm1, %v1618_v17, %v1601_v31 }
 0x3dd   :  { %1698 = vrot.lane.b32.xlu0 %v1625_v63, %s2126_s30  ;;  %v1542_v25 = vrot.slane %v1523_v38, 4 }
 0x3de   :  { %v1621_v59 = vsel %vm163_vm1, %v1613_v62, %v1620_v0 }
 0x3df   :  { %1682 = vrot.lane.b32.xlu2 %v1621_v59, %s2112_s14 }
 0x3fb   :  { %v1365_v6 = vpop.f32.mrf.mxu2 }
 0x3fc   :  { %v1530_v15 = vrot.slane %v1365_v6, 4 }
 0x403   :  { %v1457_v18 = vpop.f32.mrf.mxu2 }
 0x404   :  { %v1528_v19 = vrot.slane %v1457_v18, 4  ;;  %v1531_v22 = vsel %vm163_vm1, %v1457_v18, %v1530_v15  ;;  %v137_v15 = vld [vmem:[#allocation8 + $0x10] sm:$0xff] }
 0x405   :  { %v1539_v23 = vperm.slane %v1531_v22, %v2233_v21 }
 0x406   :  { %v1529_v24 = vsel %vm163_vm1, %v1528_v19, %v1365_v6 }
 0x407   :  { %v1535_v37 = vperm.slane %v1529_v24, %v2233_v21  ;;  %v1552_v10 = vrot.slane %v1539_v23, 4  ;;  %v1555_v36 = vsel %vm163_vm1, %v1539_v23, %v1554_v2 }
 0x408   :  { %v1563_v27 = vperm.slane %v1555_v36, %v2251_v35 }
 0x409   :  { %v1540_v28 = vrot.slane %v1535_v37, 4  ;;  %v1543_v1 = vsel %vm163_vm1, %v1535_v37, %v1542_v25  ;;  %v1553_v32 = vsel %vm163_vm1, %v1552_v10, %v1527_v13  ;;  %v138_v13 = vld [vmem:[#allocation8 + $0x18] sm:$0xff] }
 0x40a   :  { %v1551_v60 = vperm.slane %v1543_v1, %v2251_v35  ;;  %v1559_v34 = vperm.slane %v1553_v32, %v2251_v35  ;;  %v1570_v29 = vrot.slane %v1563_v27, 4  ;;  %1756 = vmatpush.msrb.mxu3 %v138_v13 }
 0x40b   :  { %v1541_v39 = vsel %vm163_vm1, %v1540_v28, %v1523_v38  ;;  %v136_v38 = vld [vmem:[#allocation8 + $0x8] sm:$0xff] }
 0x40c   :  { %v1547_v14 = vperm.slane %v1541_v39, %v2251_v35  ;;  %v1566_v40 = vrot.slane %v1551_v60, 4  ;;  %v1568_v42 = vrot.slane %v1559_v34, 4  ;;  %v1571_v43 = vsel %vm163_vm1, 0.0, %v1570_v29  ;;  %1757 = vmatpush.msrb.mxu3 %v137_v15  ;;  %v1980_v60 = vld [vmem:[#allocation2] sm:$0xff] }
 0x40d   :  { %v1637_v45 = vsel %vm163_vm1, %v1570_v29, %v1559_v34  ;;  %v1642_v46 = vrot.slane %v1571_v43, 4 }
 0x40e   :  { %v1564_v47 = vrot.slane %v1547_v14, 4  ;;  %v1567_v48 = vsel %vm163_vm1, 0.0, %v1566_v40  ;;  %v1569_v30 = vsel %vm163_vm1, 0.0, %v1568_v42  ;;  %v1641_v49 = vperm.slane %v1637_v45, %v2233_v21  ;;  %1758 = vmatpush.msrb.mxu3 %v136_v38 }
 0x40f   :  { %v1631_v50 = vrot.slane %v1567_v48, 4  ;;  %v1626_v51 = vsel %vm163_vm1, %v1566_v40, %v1547_v14  ;;  %v1643_v41 = vsel %vm163_vm1, %v1642_v46, %v1569_v30  ;;  %v1981_v40 = vld [vmem:[#allocation2 + $0x8] sm:$0xff]  ;;  %v1733_v45 = vmul.f32 %v2702_v61, %v2690_v33 }
 0x410   :  { %v1565_v52 = vsel %vm163_vm1, 0.0, %v1564_v47  ;;  %v1630_v53 = vperm.slane %v1626_v51, %v2233_v21  ;;  %v1647_v55 = vperm.slane %v1643_v41, %v2233_v21  ;;  %v1662_v56 = vrot.slane %v1641_v49, 4 }
 0x411   :  { %v1632_v9 = vsel %vm163_vm1, %v1631_v50, %v1565_v52  ;;  %v2127_v46 = vmov 32.0  }
 0x412   :  { %v1636_v57 = vperm.slane %v1632_v9, %v2233_v21  ;;  %v1650_v58 = vrot.slane %v1630_v53, 4  ;;  %v1663_v54 = vsel %vm163_vm1, %v1647_v55, %v1662_v56  ;;  %v1660_v16 = vrot.slane %v1647_v55, 4 }
 0x413   :  { %v1671_v20 = vperm.slane %v1663_v54, %v2251_v35  ;;  %1974 = vrcp.f32 %v2127_v46 }
 0x414   :  { %v1651_v26 = vsel %vm163_vm1, %v1636_v57, %v1650_v58  ;;  %v1648_v31 = vrot.slane %v1636_v57, 4  ;;  %v1661_v62 = vsel %vm163_vm1, %v1660_v16, %v1641_v49 }
 0x415   :  { %v1659_v63 = vperm.slane %v1651_v26, %v2251_v35  ;;  %v1676_v0 = vrot.slane %v1671_v20, 4  ;;  %v1667_v17 = vperm.slane %v1661_v62, %v2251_v35 }
 0x416   :  { %v1649_v59 = vsel %vm163_vm1, %v1648_v31, %v1630_v53 }
 0x417   :  { %v1677_v21 = vsel %vm163_vm1, %v1676_v0, %v1659_v63  ;;  %v1678_v4 = vrot.slane %v1659_v63, 4  ;;  %v1655_v5 = vperm.slane %v1649_v59, %v2251_v35  ;;  %v1672_v6 = vrot.slane %v1667_v17, 4  ;;  %v135_v35 = vld [vmem:[#allocation8] sm:$0xff] }
 0x418   :  { %1692 = vrot.lane.b32.xlu0 %v1677_v21, %s2125_s29  ;;  %1759 = vmatpush.msrb.mxu3 %v135_v35  ;;  %v1939_v21 = vld [vmem:[%s2842_s7] ss:$0 sm:$0xff] }
 0x419   :  { %v1679_v7 = vsel %vm163_vm1, %v1671_v20, %v1678_v4  ;;  %v1674_v8 = vrot.slane %v1655_v5, 4  ;;  %v1673_v12 = vsel %vm163_vm1, %v1672_v6, %v1655_v5  ;;  %v1975_v47 = vpop.eup %1974 }
 0x41a   :  { %1700 = vrot.lane.b32.xlu1 %v1679_v7, %s2126_s30  ;;  %v1776_v48 = vmul.f32 32.0, %v1975_v47 }
 0x41b   :  { %v1675_v11 = vsel %vm163_vm1, %v1667_v17, %v1674_v8  ;;  %vm1780_vm1 = vweird.f32 %v1975_v47 }
 0x41c   :  { %1684 = vrot.lane.b32.xlu2 %v1675_v11, %s2112_s14  ;;  %v1777_v30 = vsub.f32 1.0, %v1776_v48 }
 0x41e   :  { %v1778_v49 = vmul.f32 %v1975_v47, %v1777_v30 }
 0x420   :  { %v1779_v50 = vadd.f32 %v1975_v47, %v1778_v49 }
 0x422   :  { %v1781_v51 = vsel %vm1780_vm1, %v1975_v47, %v1779_v50 }
 0x439   :  { %v1683_v18 = vpop.permute.xlu2 %1682 }
 0x43a   :  { %v1704_v19 = vsel %vm875_vm2, %v2751_v3, %v1683_v18  ;;  %v1937_v3 = vld [vmem:[%s2840_s5] ss:$0 sm:$0xff] }
 0x44d   :  { %v1691_v22 = vpop.permute.xlu1 %1690 }
 0x44e   :  { %v1707_v2 = vsel %vm1706_vm12, %v1704_v19, %v1691_v22 }
 0x44f   :  { %v1699_v23 = vpop.permute.xlu0 %1698 }
 0x450   :  { %v1710_v24 = vsel %vm1709_vm13, %v1707_v2, %v1699_v23 }
 0x451   :  { %1895 = vmatmul.msk.f32.vlgmr.msrb.gmra.mxu3 %vm103_vm0, %v1710_v24 }
 0x476   :  { %v1685_v25 = vpop.permute.xlu2 %1684 }
 0x477   :  { %v1705_v37 = vsel %vm875_vm2, %v1673_v12, %v1685_v25 }
 0x48a   :  { %v1693_v10 = vpop.permute.xlu0 %1692 }
 0x48b   :  { %v1708_v36 = vsel %vm1706_vm12, %v1705_v37, %v1693_v10 }
 0x48c   :  { %v1701_v27 = vpop.permute.xlu1 %1700 }
 0x48d   :  { %v1711_v28 = vsel %vm1709_vm13, %v1708_v36, %v1701_v27 }
 0x48e   :  { %1896 = vmatmul.msk.f32.gmra.mxu3 %vm103_vm0, %v1711_v28 }
 0x4d4   :  { %v1761_v1 = vpop.f32.mrf.mxu3 }
 0x4d5   :  { %v1762_v32 = vadd.f32 %v1937_v3, %v1761_v1 }
 0x4d7   :  { %v1767_v34 = vadd.f32 %v1980_v60, %v1762_v32 }
 0x4d9   :  { %v1769_v29 = vsel %vm103_vm0, %v1767_v34, 0.0 }
 0x4da   :  { %1770 = vadd.xlane.f32.xlu2 %v1769_v29 }
 0x511   :  { %v1764_v39 = vpop.f32.mrf.mxu3 }
 0x512   :  { %v2805_v14 = vadd.f32 %v1937_v3, %v1764_v39 }
 0x514   :  { %v1768_v42 = vadd.f32 %v1981_v40, %v2805_v14 }
 0x516   :  { %v1772_v43 = vsel %vm103_vm0, %v1768_v42, 0.0 }
 0x517   :  { %1773 = vadd.xlane.f32.xlu0 %v1772_v43 }
 0x52b   :  { %1832 = vrot.lane.b32.xlu0 %v1733_v45, %s2122_s28 }
 0x54d   :  { %v1771_v41 = vpop.xlane.xlu2 %1770 }
 0x54e   :  { %v1782_v52 = vmul.f32 %v1781_v51, %v1771_v41 }
 0x550   :  { %v1784_v53 = vsub.f32 %v1767_v34, %v1782_v52 }
 0x552   :  { %v1786_v55 = vmul.f32 %v1784_v53, %v1784_v53 }
 0x554   :  { %v1788_v56 = vsel %vm103_vm0, %v1786_v55, 0.0 }
 0x555   :  { %1789 = vadd.xlane.f32.xlu1 %v1788_v56 }
 0x56e   :  { %1834 = vrot.lane.b32.xlu1 %v2705_v44, %s2122_s28  ;;  %v1938_v44 = vld [vmem:[%s2841_s6] ss:$0 sm:$0xff]  ;;  %s2128_s6 = smov [#allocation10]  }
 0x56f   :  { %s1852_s7 = sshll.u32 %s2128_s6, 4  ;;  %s1853_s7 = int_to_ptr.vmem [resolvable:$true] %s1852_s7 }
 0x58a   :  { %v1774_v33 = vpop.xlane.xlu0 %1773 }
 0x58b   :  { %v1783_v61 = vmul.f32 %v1781_v51, %v1774_v33 }
 0x58d   :  { %v1785_v9 = vsub.f32 %v1768_v42, %v1783_v61 }
 0x58f   :  { %v1787_v57 = vmul.f32 %v1785_v9, %v1785_v9 }
 0x591   :  { %v1791_v58 = vsel %vm103_vm0, %v1787_v57, 0.0 }
 0x592   :  { %1792 = vadd.xlane.f32.xlu2 %v1791_v58 }
 0x59d   :  { %v1833_v7 = vpop.permute.xlu0 %1832 }
 0x5c8   :  { %v1790_v54 = vpop.xlane.xlu1 %1789 }
 0x5c9   :  { %v1794_v16 = vmul.f32 %v1790_v54, %v1781_v51 }
 0x5cb   :  { %v1796_v20 = vadd.f32 1e-05, %v1794_v16 }
 0x5cd   :  { %1976 = vrsqrt.f32 %v1796_v20  ;;  %vm1804_vm14 = vweird.f32 %v1796_v20 }
 0x5d3   :  { %v1977_v26 = vpop.eup %1976 }
 0x5d4   :  { %v1799_v31 = vmul.f32 %v1977_v26, %v1796_v20  ;;  %vm1805_vm2 = vweird.f32 %v1977_v26 }
 0x5d5   :  { %vm1806_vm15 = vmor %vm1804_vm14, %vm1805_vm2 }
 0x5d6   :  { %v1800_v62 = vmul.f32 %v1977_v26, %v1799_v31 }
 0x5d8   :  { %v1801_v63 = vmul.f32 0.5, %v1800_v62 }
 0x5da   :  { %v1802_v0 = vsub.f32 1.5, %v1801_v63 }
 0x5dc   :  { %v1803_v17 = vmul.f32 %v1977_v26, %v1802_v0 }
 0x5de   :  { %v1807_v59 = vsel %vm1806_vm15, %v1977_v26, %v1803_v17 }
 0x5df   :  { %v1818_v4 = vmul.f32 %v1807_v59, %v1784_v53 }
 0x5e0   :  { %v1835_v36 = vpop.permute.xlu1 %1834 }
 0x5e1   :  { %v1823_v5 = vmul.f32 %v1938_v44, %v1818_v4 }
 0x5e3   :  { %v1828_v6 = vadd.f32 %v1939_v21, %v1823_v5 }
 0x5e5   :  { %v1838_v8 = vsel %vm103_vm0, %v1828_v6, %v1762_v32 }
 0x5e6   :  { %v1841_v12 = vsel %vm1840_vm3, %v1838_v8, %v1833_v7 }
 0x5e7   :  { %v1844_v11 = vsel %vm1843_vm4, %v1841_v12, 0.0 }
 0x5e8   :  { %1846 = vst [vmem:[#allocation10] sm:$0xff] %v1844_v11 }
 0x605   :  { %v1793_v13 = vpop.xlane.xlu2 %1792 }
 0x606   :  { %v1795_v15 = vmul.f32 %v1793_v13, %v1781_v51 }
 0x608   :  { %v1797_v38 = vadd.f32 1e-05, %v1795_v15 }
 0x60a   :  { %1978 = vrsqrt.f32 %v1797_v38  ;;  %vm1814_vm6 = vweird.f32 %v1797_v38 }
 0x610   :  { %v1979_v35 = vpop.eup %1978 }
 0x611   :  { %v1809_v18 = vmul.f32 %v1979_v35, %v1797_v38  ;;  %vm1815_vm5 = vweird.f32 %v1979_v35 }
 0x612   :  { %vm1816_vm7 = vmor %vm1814_vm6, %vm1815_vm5 }
 0x613   :  { %v1810_v19 = vmul.f32 %v1979_v35, %v1809_v18 }
 0x615   :  { %v1811_v22 = vmul.f32 0.5, %v1810_v19 }
 0x617   :  { %v1812_v2 = vsub.f32 1.5, %v1811_v22 }
 0x619   :  { %v1813_v23 = vmul.f32 %v1979_v35, %v1812_v2 }
 0x61b   :  { %v1817_v24 = vsel %vm1816_vm7, %v1979_v35, %v1813_v23 }
 0x61c   :  { %v1819_v25 = vmul.f32 %v1817_v24, %v1785_v9 }
 0x61e   :  { %v1824_v37 = vmul.f32 %v1938_v44, %v1819_v25 }
 0x620   :  { %v1829_v10 = vadd.f32 %v1939_v21, %v1824_v37 }
 0x622   :  { %v1839_v27 = vsel %vm103_vm0, %v1829_v10, %v2805_v14 }
 0x623   :  { %v1842_v28 = vsel %vm1840_vm3, %v1839_v27, %v1835_v36 }
 0x624   :  { %v1845_v3 = vsel %vm1843_vm4, %v1842_v28, 0.0 }
 0x625   :  { %1847 = vst [vmem:[#allocation10 + $0x8] sm:$0xff] %v1845_v3 }
 0x626   :  { %1860 = dma.vmem_to_hbm [thread:$0]  %s1853_s7, 256, %s1855_s18, [#allocation4], %s2111_s13, %s2111_s13, %s2112_s14  }
 0x627   :  { %2108 = dma.done.wait [#allocation4], 256  }
 0x628   :  { %2109 = vsyncadd [#allocation4], 4294967040 }
 0x629   :  { %1865 = vsyncpa [#allocation3], 1 }
 0x62a   :  { %1866 = vsyncpa [#allocation6], 1 }
 0x62b   :  { %1867 = vsyncpa [#allocation9], 1 }
 0x62c   :  { %1868 = vsyncpa [#allocation4], 1 }

</bundles_post_ra>
